<compile_context>
chip_gen: v5e
topology: v5e:2x2
jax: 0.10.0
libtpu: 0.0.40
codegen_flags: <defaults>
</compile_context>

<pallas_src>
import jax
import jax.numpy as jnp
from jax import lax
from jax.experimental import pallas as pl
from jax.experimental.pallas import tpu as pltpu


def pack_weight_slab(params):
    """Pack all four layers into one lane-dense (rows, 128) f32 slab (done ONCE).

    Per-layer block layout (rows padded to an 8-sublane multiple):
        rows [off, off+out)      : W in PyTorch (out, in) orientation, cols [0, in)
        row  off+out             : bias as a ROW vector, cols [0, out)
    Returns (slab, offsets) with offsets[i] = (row_off, out_dim, in_dim).
    """
    layers = [("w1", "b1"), ("w2", "b2"), ("w3", "b3"), ("w4", "b4")]
    mats = [(params[w], params[b]) for w, b in layers]

    max_cols = max(max(w.shape) for w, _ in mats)
    lane_cols = -(-max_cols // 128) * 128            # pad cols to a lane-tile multiple

    offs, blocks, r = [], [], 0
    for w, b in mats:
        out_d, in_d = w.shape
        rows = -(-(out_d + 1) // 8) * 8              # W rows + 1 bias row, padded to 8
        blk = jnp.zeros((rows, lane_cols), jnp.float32)
        blk = blk.at[:out_d, :in_d].set(w.astype(jnp.float32))
        blk = blk.at[out_d, :out_d].set(b.astype(jnp.float32))
        offs.append((r, out_d, in_d))
        blocks.append(blk)
        r += rows
    return jnp.concatenate(blocks, axis=0), tuple(offs)


def _build_kernel(offs):
    (o1, n1, i1), (o2, n2, i2), (o3, n3, i3), (o4, n4, i4) = offs
    # Contract the last dims of both operands: act @ W.T (MXU-native trans_b form).
    dn = (((1,), (1,)), ((), ()))

    def kernel(x_ref, w_ref, recon_ref, latent_ref):
        x = x_ref[...]                                          # (TB, input_dim)

        # Static slices of the VMEM-resident weight slab (PyTorch (out, in) orientation).
        w1 = w_ref[o1:o1 + n1, :i1]; b1 = w_ref[o1 + n1:o1 + n1 + 1, :n1]
        w2 = w_ref[o2:o2 + n2, :i2]; b2 = w_ref[o2 + n2:o2 + n2 + 1, :n2]
        w3 = w_ref[o3:o3 + n3, :i3]; b3 = w_ref[o3 + n3:o3 + n3 + 1, :n3]
        w4 = w_ref[o4:o4 + n4, :i4]; b4 = w_ref[o4 + n4:o4 + n4 + 1, :n4]

        # Encoder.
        h1 = jnp.maximum(
            lax.dot_general(x, w1, dn, preferred_element_type=jnp.float32) + b1, 0.0)
        z = lax.dot_general(h1, w2, dn, preferred_element_type=jnp.float32) + b2
        # Decoder.
        h2 = jnp.maximum(
            lax.dot_general(z, w3, dn, preferred_element_type=jnp.float32) + b3, 0.0)
        r = lax.dot_general(h2, w4, dn, preferred_element_type=jnp.float32) + b4

        latent_ref[...] = z.astype(latent_ref.dtype)
        recon_ref[...] = r.astype(recon_ref.dtype)

    return kernel


def make_forward(params, *, block_b=4096):
    """Pack weights once and return a jitted forward(x) -> (reconstructed, latent)."""
    assert block_b >= 8 and block_b % 8 == 0
    slab, offs = pack_weight_slab(params)          # one-time packing, off the hot path
    kernel = _build_kernel(offs)
    hidden, input_dim = params["w1"].shape
    latent_dim = params["w2"].shape[0]
    vmem = pltpu.MemorySpace.VMEM

    @jax.jit
    def forward(x):
        B, D = x.shape
        assert D == input_dim
        x = x.astype(jnp.float32)

        # Batch tile: as large as block_b allows, but keep >= 2 grid steps when the batch
        # permits so both v7x TensorCores share the memory-bound work.
        b_sub = -(-B // 8)                                   # batch length in 8-row units
        tb_sub = min(block_b // 8, max(1, -(-b_sub // 2)))
        TB = 8 * tb_sub
        B_pad = -(-B // TB) * TB
        grid = (B_pad // TB,)
        if B_pad != B:                                       # ragged tail only
            x = jnp.pad(x, ((0, B_pad - B), (0, 0)))

        flops = 2 * B_pad * hidden * (2 * input_dim + 2 * latent_dim)
        bytes_accessed = 4 * (B_pad * (2 * input_dim + latent_dim) + slab.size)

        recon, latent = pl.pallas_call(
            kernel,
            out_shape=(jax.ShapeDtypeStruct((B_pad, input_dim), jnp.float32),
                       jax.ShapeDtypeStruct((B_pad, latent_dim), jnp.float32)),
            grid=grid,
            in_specs=[
                pl.BlockSpec((TB, input_dim), lambda i: (i, 0), memory_space=vmem),
                # Constant index_map -> weight slab DMA'd once, resident across steps.
                pl.BlockSpec(slab.shape, lambda i: (0, 0), memory_space=vmem),
            ],
            out_specs=(
                pl.BlockSpec((TB, input_dim), lambda i: (i, 0), memory_space=vmem),
                pl.BlockSpec((TB, latent_dim), lambda i: (i, 0), memory_space=vmem),
            ),
            compiler_params=pltpu.CompilerParams(
                dimension_semantics=("parallel",),
                vmem_limit_bytes=32 * 1024 * 1024,
            ),
            cost_estimate=pl.CostEstimate(
                flops=int(flops), transcendentals=0, bytes_accessed=int(bytes_accessed)),
        )(x, slab)

        if B_pad != B:   # padded rows carry bias+ReLU garbage -> slice them off
            recon, latent = recon[:B], latent[:B]
        return recon, latent

    return forward


def init_params(key, input_dim, latent_dim=3, hidden=8):
    """Deterministic synthetic init, PyTorch orientation: W (out_features, in_features)."""
    ks = jax.random.split(key, 8)

    def lin(kw, kb, fan_in, fan_out):
        bound = float(fan_in) ** -0.5
        w = jax.random.uniform(kw, (fan_out, fan_in), jnp.float32, -bound, bound)
        b = jax.random.uniform(kb, (fan_out,), jnp.float32, -bound, bound)
        return w, b

    w1, b1 = lin(ks[0], ks[1], input_dim, hidden)      # encoder[0]
    w2, b2 = lin(ks[2], ks[3], hidden, latent_dim)     # encoder[2]
    w3, b3 = lin(ks[4], ks[5], latent_dim, hidden)     # decoder[0]
    w4, b4 = lin(ks[6], ks[7], hidden, input_dim)      # decoder[2]
    return dict(w1=w1, b1=b1, w2=w2, b2=b2, w3=w3, b3=b3, w4=w4, b4=b4)


def autoencoder_ref(x, p):
    """Pure-JAX reference mirroring the PyTorch forward (y = x @ W.T + b)."""
    h1 = jnp.maximum(x @ p["w1"].T + p["b1"], 0.0)
    z = h1 @ p["w2"].T + p["b2"]
    h2 = jnp.maximum(z @ p["w3"].T + p["b3"], 0.0)
    r = h2 @ p["w4"].T + p["b4"]
    return r, z


if __name__ == "__main__":
    key = jax.random.PRNGKey(0)
    k_x, k_p = jax.random.split(key)

    # Small but grid-exercising shapes: batch=1024 -> TB=512, two parallel grid steps.
    batch, input_dim, latent_dim = 1024, 16, 3
    x = jax.random.normal(k_x, (batch, input_dim), jnp.float32)
    params = init_params(k_p, input_dim, latent_dim)

    forward = make_forward(params, block_b=4096)   # weights packed once, here
    recon, latent = forward(x)
    recon = jax.block_until_ready(recon)
    latent = jax.block_until_ready(latent)

    # Correctness check against the pure-JAX reference.  Tolerance allows for differing
    # f32 matmul decompositions (MXU multi-pass vs XLA default precision) and accumulation
    # order; real layout/weight bugs produce O(0.1-1) errors at these magnitudes.
    recon_ref, latent_ref = autoencoder_ref(x, params)
    assert recon.shape == (batch, input_dim) and latent.shape == (batch, latent_dim)
    assert bool(jnp.all(jnp.isfinite(recon))) and bool(jnp.all(jnp.isfinite(latent)))
    assert jnp.allclose(recon, recon_ref, atol=1e-3, rtol=1e-3)
    assert jnp.allclose(latent, latent_ref, atol=1e-3, rtol=1e-3)

    print("KERNEL_OK")
</pallas_src>

<mosaic_0001>
module attributes {stable_mosaic.version = 11 : i64} {
  func.func @kernel(%arg0: i32, %arg1: memref<512x16xf32, #tpu.memory_space<vmem>>, %arg2: memref<64x128xf32, #tpu.memory_space<vmem>>, %arg3: memref<512x16xf32, #tpu.memory_space<vmem>>, %arg4: memref<512x3xf32, #tpu.memory_space<vmem>>) attributes {dimension_semantics = [#tpu.dimension_semantics<parallel>], iteration_bounds = array<i64: 2>, scalar_prefetch = 0 : i64, scratch_operands = 0 : i64, tpu.core_type = #tpu.core_type<tc>, window_params = [{transform_indices = @transform_0, window_bounds = array<i64: 512, 16>}, {pipeline_mode = #tpu.pipeline_mode<synchronous>, transform_indices = @transform_1, window_bounds = array<i64: 64, 128>}, {transform_indices = @transform_2, window_bounds = array<i64: 512, 16>}, {transform_indices = @transform_3, window_bounds = array<i64: 512, 3>}]} {
    %c0 = arith.constant 0 : index
    %c0_0 = arith.constant 0 : index
    %0 = vector.load %arg1[%c0, %c0_0] : memref<512x16xf32, #tpu.memory_space<vmem>>, vector<512x16xf32>
    %c0_1 = arith.constant 0 : index
    %c0_2 = arith.constant 0 : index
    %1 = vector.load %arg2[%c0_1, %c0_2] : memref<64x128xf32, #tpu.memory_space<vmem>>, vector<8x16xf32>
    %c8 = arith.constant 8 : index
    %c0_3 = arith.constant 0 : index
    %2 = vector.load %arg2[%c8, %c0_3] : memref<64x128xf32, #tpu.memory_space<vmem>>, vector<1x8xf32>
    %c16 = arith.constant 16 : index
    %c0_4 = arith.constant 0 : index
    %3 = vector.load %arg2[%c16, %c0_4] : memref<64x128xf32, #tpu.memory_space<vmem>>, vector<3x8xf32>
    %c19 = arith.constant 19 : index
    %c0_5 = arith.constant 0 : index
    %4 = vector.load %arg2[%c19, %c0_5] : memref<64x128xf32, #tpu.memory_space<vmem>>, vector<1x3xf32>
    %c24 = arith.constant 24 : index
    %c0_6 = arith.constant 0 : index
    %5 = vector.load %arg2[%c24, %c0_6] : memref<64x128xf32, #tpu.memory_space<vmem>>, vector<8x3xf32>
    %c32 = arith.constant 32 : index
    %c0_7 = arith.constant 0 : index
    %6 = vector.load %arg2[%c32, %c0_7] : memref<64x128xf32, #tpu.memory_space<vmem>>, vector<1x8xf32>
    %c40 = arith.constant 40 : index
    %c0_8 = arith.constant 0 : index
    %7 = vector.load %arg2[%c40, %c0_8] : memref<64x128xf32, #tpu.memory_space<vmem>>, vector<16x8xf32>
    %c56 = arith.constant 56 : index
    %c0_9 = arith.constant 0 : index
    %8 = vector.load %arg2[%c56, %c0_9] : memref<64x128xf32, #tpu.memory_space<vmem>>, vector<1x16xf32>
    %cst = arith.constant dense<0.000000e+00> : vector<512x8xf32>
    %9 = tpu.matmul %0, %1, %cst {dimension_numbers = #tpu.dot_dimension_numbers<[1], [1], [0], [0], [0, 0, 1, 0], [], []>} : vector<512x16xf32>, vector<8x16xf32>, vector<512x8xf32> -> vector<512x8xf32>
    %10 = vector.broadcast %2 : vector<1x8xf32> to vector<512x8xf32>
    %11 = arith.addf %9, %10 : vector<512x8xf32>
    %cst_10 = arith.constant 0.000000e+00 : f32
    %12 = vector.broadcast %cst_10 : f32 to vector<512x8xf32>
    %13 = arith.maximumf %11, %12 : vector<512x8xf32>
    %cst_11 = arith.constant dense<0.000000e+00> : vector<512x3xf32>
    %14 = tpu.matmul %13, %3, %cst_11 {dimension_numbers = #tpu.dot_dimension_numbers<[1], [1], [0], [0], [0, 0, 1, 0], [], []>} : vector<512x8xf32>, vector<3x8xf32>, vector<512x3xf32> -> vector<512x3xf32>
    %15 = vector.broadcast %4 : vector<1x3xf32> to vector<512x3xf32>
    %16 = arith.addf %14, %15 : vector<512x3xf32>
    %cst_12 = arith.constant dense<0.000000e+00> : vector<512x8xf32>
    %17 = tpu.matmul %16, %5, %cst_12 {dimension_numbers = #tpu.dot_dimension_numbers<[1], [1], [0], [0], [0, 0, 1, 0], [], []>} : vector<512x3xf32>, vector<8x3xf32>, vector<512x8xf32> -> vector<512x8xf32>
    %18 = vector.broadcast %6 : vector<1x8xf32> to vector<512x8xf32>
    %19 = arith.addf %17, %18 : vector<512x8xf32>
    %cst_13 = arith.constant 0.000000e+00 : f32
    %20 = vector.broadcast %cst_13 : f32 to vector<512x8xf32>
    %21 = arith.maximumf %19, %20 : vector<512x8xf32>
    %cst_14 = arith.constant dense<0.000000e+00> : vector<512x16xf32>
    %22 = tpu.matmul %21, %7, %cst_14 {dimension_numbers = #tpu.dot_dimension_numbers<[1], [1], [0], [0], [0, 0, 1, 0], [], []>} : vector<512x8xf32>, vector<16x8xf32>, vector<512x16xf32> -> vector<512x16xf32>
    %23 = vector.broadcast %8 : vector<1x16xf32> to vector<512x16xf32>
    %24 = arith.addf %22, %23 : vector<512x16xf32>
    %c0_15 = arith.constant 0 : index
    %c0_16 = arith.constant 0 : index
    %25 = vector.load %arg4[%c0_15, %c0_16] : memref<512x3xf32, #tpu.memory_space<vmem>>, vector<512x3xf32>
    tpu.vector_store %arg4[%c0_15, %c0_16], %16 {strides = array<i32>} : memref<512x3xf32, #tpu.memory_space<vmem>>, vector<512x3xf32>,
    %c0_17 = arith.constant 0 : index
    %c0_18 = arith.constant 0 : index
    %26 = vector.load %arg3[%c0_17, %c0_18] : memref<512x16xf32, #tpu.memory_space<vmem>>, vector<512x16xf32>
    tpu.vector_store %arg3[%c0_17, %c0_18], %24 {strides = array<i32>} : memref<512x16xf32, #tpu.memory_space<vmem>>, vector<512x16xf32>,
    return
  }
  func.func @transform_0(%arg0: i32) -> (i32, i32) {
    %c0_i32 = arith.constant 0 : i32
    %c0_i32_0 = arith.constant 0 : i32
    return %arg0, %c0_i32 : i32, i32
  }
  func.func @transform_1(%arg0: i32) -> (i32, i32) {
    %c0_i32 = arith.constant 0 : i32
    %c0_i32_0 = arith.constant 0 : i32
    %c0_i32_1 = arith.constant 0 : i32
    return %c0_i32, %c0_i32_0 : i32, i32
  }
  func.func @transform_2(%arg0: i32) -> (i32, i32) {
    %c0_i32 = arith.constant 0 : i32
    %c0_i32_0 = arith.constant 0 : i32
    return %arg0, %c0_i32 : i32, i32
  }
  func.func @transform_3(%arg0: i32) -> (i32, i32) {
    %c0_i32 = arith.constant 0 : i32
    %c0_i32_0 = arith.constant 0 : i32
    return %arg0, %c0_i32 : i32, i32
  }
}

</mosaic_0001>

<bundles_post_ra>
// kernel: forward.1
= control target key start
LH: loop header
LB: loop body
LE: loop exit
PB: predicated region body
PF: predicated region fallthrough
CT: control target
= control target key end

     0   :  { %s2551_s12 = smov 0   ;;  %s3457_s0 = inlined_call_operand.vmem [shape: f32[1024,16], index: 0, kind: input, shape index: {}]   ;;  %s3458_s1 = inlined_call_operand.vmem [shape: f32[64,128], index: 1, kind: input, shape index: {}]   ;;  %s3459_s2 = inlined_call_operand.vmem [shape: f32[1024,16], index: 2, kind: output, shape index: {0}]   ;;  %s3460_s3 = inlined_call_operand.vmem [shape: f32[1024,3], index: 3, kind: output, shape index: {1}]  }
   0x1 LB: > { %s2233_s13 = sadd.s32 4294967295, %s2529_s12   ;;  %p2237_p0 = scmp.ge.s32.totalorder %s2529_s12, 1  ;;  %s2529_s12 = sphi %s2551_s12, %s14_s12  }
   0x2   : > { %p141_p1 = scmp.lt.s32.totalorder %s2529_s12, 3 }
   0x4   : > { %p142_p2 = pnand %p2237_p0, %p141_p1 }
   0x5   : > { %s2238_s16 = sshll.u32 (!%p142_p2), %s2233_s13, 6 }
   0x6   : > { %145 = sbr.rel (%p142_p2) target bundleno = 1049 (0x419), region = 28  ;;  %p171_p3 = scmp.lt.s32.totalorder (!%p142_p2), %s2238_s16, 127 }
   0xb   : > { %v252_v0 = vld [vmem:[%s3458_s1] sm:$0xff]  ;;  %vm262_vm0 = vcmask 130048   ;;  %s3462_s16 = smov (!%p171_p3, %s2238_s16), 127  ;;  %v254_v14 = vld [vmem:[%s3458_s1 + $0x10] sm:$0x7]  ;;  %vm732_vm1 = vcmask 64512  }
   0xc   : > { %2244 = vmatpush.xpose.msk.msra.mxu0 %vm262_vm0, %v252_v0  ;;  %s2563_s17 = sshll.u32 %s3462_s16, 3  ;;  %2309 = vmatpush.xpose.msk.msra.mxu1 %vm732_vm1, %v254_v14  ;;  %v2610_v18 = vld [vmem:[%s3458_s1 + $0x8] ss:$0 sm:$0xff]  ;;  %vm1138_vm2 = vcmask 23552  }
   0xd   : > { %s2569_s20 = scalar_lea.vmem %s3457_s0, %s2563_s17  ;;  %s2691_s4 = scalar_lea.vmem %s3460_s3, %s2563_s17 }
   0xe   : > { %v188_v1 = vld [vmem:[%s2569_s20] sm:$0xff]  ;;  %v189_v2 = vld [vmem:[%s2569_s20 + $0x8] sm:$0xff]  ;;  %v190_v3 = vld [vmem:[%s2569_s20 + $0x10] sm:$0xff]  ;;  %s3022_s19 = scalar_lea.vmem %s3459_s2, %s2563_s17 }
   0xf   : > { %2245 = vmatmul.msk.f32.vlgmr.msra.gmra.mxu0 %vm262_vm0, %v188_v1  ;;  %v191_v4 = vld [vmem:[%s2569_s20 + $0x18] sm:$0xff]  ;;  %v192_v5 = vld [vmem:[%s2569_s20 + $0x20] sm:$0xff]  ;;  %v193_v6 = vld [vmem:[%s2569_s20 + $0x28] sm:$0xff] }
  0x10   : > { %v194_v7 = vld [vmem:[%s2569_s20 + $0x30] sm:$0xff]  ;;  %v195_v8 = vld [vmem:[%s2569_s20 + $0x38] sm:$0xff]  ;;  %v196_v9 = vld [vmem:[%s2569_s20 + $0x40] sm:$0xff] }
  0x11   : > { %v197_v10 = vld [vmem:[%s2569_s20 + $0x48] sm:$0xff]  ;;  %v198_v11 = vld [vmem:[%s2569_s20 + $0x50] sm:$0xff]  ;;  %v199_v12 = vld [vmem:[%s2569_s20 + $0x58] sm:$0xff] }
  0x12   : > { %v200_v13 = vld [vmem:[%s2569_s20 + $0x60] sm:$0xff]  ;;  %v201_v15 = vld [vmem:[%s2569_s20 + $0x68] sm:$0xff]  ;;  %v202_v16 = vld [vmem:[%s2569_s20 + $0x70] sm:$0xff] }
  0x13   : > { %v203_v17 = vld [vmem:[%s2569_s20 + $0x78] sm:$0xff]  ;;  %v204_v20 = vld [vmem:[%s2569_s20 + $0x80] sm:$0xff]  ;;  %v205_v24 = vld [vmem:[%s2569_s20 + $0x88] sm:$0xff] }
  0x14   : > { %v206_v28 = vld [vmem:[%s2569_s20 + $0x90] sm:$0xff]  ;;  %v207_v32 = vld [vmem:[%s2569_s20 + $0x98] sm:$0xff]  ;;  %v208_v36 = vld [vmem:[%s2569_s20 + $0xa0] sm:$0xff] }
  0x15   : > { %v209_v40 = vld [vmem:[%s2569_s20 + $0xa8] sm:$0xff]  ;;  %v210_v44 = vld [vmem:[%s2569_s20 + $0xb0] sm:$0xff]  ;;  %v211_v48 = vld [vmem:[%s2569_s20 + $0xb8] sm:$0xff] }
  0x16   : > { %v212_v52 = vld [vmem:[%s2569_s20 + $0xc0] sm:$0xff]  ;;  %v213_v56 = vld [vmem:[%s2569_s20 + $0xc8] sm:$0xff]  ;;  %v214_v60 = vld [vmem:[%s2569_s20 + $0xd0] sm:$0xff] }
  0x17   : > { %2246 = vmatmul.msk.f32.gmra.mxu0 %vm262_vm0, %v189_v2  ;;  %v215_v0 = vld [vmem:[%s2569_s20 + $0xd8] sm:$0xff] }
  0x1f   : > { %2247 = vmatmul.msk.f32.gmra.mxu0 %vm262_vm0, %v190_v3 }
  0x27   : > { %2248 = vmatmul.msk.f32.gmra.mxu0 %vm262_vm0, %v191_v4  ;;  %v216_v4 = vld [vmem:[%s2569_s20 + $0xe0] sm:$0xff] }
  0x2f   : > { %2249 = vmatmul.msk.f32.gmra.mxu0 %vm262_vm0, %v192_v5 }
  0x37   : > { %2250 = vmatmul.msk.f32.gmra.mxu0 %vm262_vm0, %v193_v6  ;;  %v256_v6 = vld [vmem:[%s3458_s1 + $0x18] sm:$0xff] }
  0x38   : > { %2374 = vmatpush.xpose.msk.msra.mxu2 %vm1138_vm2, %v256_v6 }
  0x3f   : > { %2251 = vmatmul.msk.f32.gmra.mxu0 %vm262_vm0, %v194_v7 }
  0x47   : > { %2252 = vmatmul.msk.f32.gmra.mxu0 %vm262_vm0, %v195_v8 }
  0x4f   : > { %2253 = vmatmul.msk.f32.gmra.mxu0 %vm262_vm0, %v196_v9  ;;  %v217_v9 = vld [vmem:[%s2569_s20 + $0xe8] sm:$0xff] }
  0x57   : > { %2254 = vmatmul.msk.f32.gmra.mxu0 %vm262_vm0, %v197_v10 }
  0x5f   : > { %2255 = vmatmul.msk.f32.gmra.mxu0 %vm262_vm0, %v198_v11 }
  0x67   : > { %2256 = vmatmul.msk.f32.gmra.mxu0 %vm262_vm0, %v199_v12 }
  0x6f   : > { %2257 = vmatmul.msk.f32.gmra.mxu0 %vm262_vm0, %v200_v13  ;;  %v218_v13 = vld [vmem:[%s2569_s20 + $0xf0] sm:$0xff] }
  0x77   : > { %2258 = vmatmul.msk.f32.gmra.mxu0 %vm262_vm0, %v201_v15 }
  0x7f   : > { %2259 = vmatmul.msk.f32.gmra.mxu0 %vm262_vm0, %v202_v16 }
  0x87   : > { %2260 = vmatmul.msk.f32.gmra.mxu0 %vm262_vm0, %v203_v17  ;;  %v219_v17 = vld [vmem:[%s2569_s20 + $0xf8] sm:$0xff] }
  0x8c   : > { %v475_v19 = vpop.f32.mrf.mxu0 }
  0x8d   : > { %v476_v21 = vadd.f32 %v2610_v18, %v475_v19 }
  0x8f   : > { %v667_v22 = vmax.f32 %v476_v21, 0.0  ;;  %2261 = vmatmul.msk.f32.gmra.mxu0 %vm262_vm0, %v204_v20  ;;  %v2683_v21 = vld [vmem:[%s3458_s1 + $0x13] ss:$0 sm:$0xff] }
  0x91   : > { %2310 = vmatmul.msk.f32.vlgmr.msra.gmra.mxu1 %vm732_vm1, %v667_v22 }
  0x94   : > { %v478_v23 = vpop.f32.mrf.mxu0 }
  0x95   : > { %v479_v25 = vadd.f32 %v2610_v18, %v478_v23  ;;  %v220_v23 = vld [vmem:[%s2569_s20 + $0x100] sm:$0xff] }
  0x97   : > { %v668_v26 = vmax.f32 %v479_v25, 0.0  ;;  %2262 = vmatmul.msk.f32.gmra.mxu0 %vm262_vm0, %v205_v24 }
  0x99   : > { %2311 = vmatmul.msk.f32.gmra.mxu1 %vm732_vm1, %v668_v26 }
  0x9c   : > { %v481_v27 = vpop.f32.mrf.mxu0 }
  0x9d   : > { %v482_v29 = vadd.f32 %v2610_v18, %v481_v27 }
  0x9f   : > { %v669_v30 = vmax.f32 %v482_v29, 0.0  ;;  %2263 = vmatmul.msk.f32.gmra.mxu0 %vm262_vm0, %v206_v28  ;;  %v221_v29 = vld [vmem:[%s2569_s20 + $0x108] sm:$0xff] }
  0xa1   : > { %2312 = vmatmul.msk.f32.gmra.mxu1 %vm732_vm1, %v669_v30 }
  0xa4   : > { %v484_v31 = vpop.f32.mrf.mxu0 }
  0xa5   : > { %v485_v33 = vadd.f32 %v2610_v18, %v484_v31 }
  0xa7   : > { %v670_v34 = vmax.f32 %v485_v33, 0.0  ;;  %2264 = vmatmul.msk.f32.gmra.mxu0 %vm262_vm0, %v207_v32 }
  0xa9   : > { %2313 = vmatmul.msk.f32.gmra.mxu1 %vm732_vm1, %v670_v34 }
  0xac   : > { %v487_v35 = vpop.f32.mrf.mxu0 }
  0xad   : > { %v488_v37 = vadd.f32 %v2610_v18, %v487_v35  ;;  %v222_v35 = vld [vmem:[%s2569_s20 + $0x110] sm:$0xff] }
  0xaf   : > { %v671_v38 = vmax.f32 %v488_v37, 0.0  ;;  %2265 = vmatmul.msk.f32.gmra.mxu0 %vm262_vm0, %v208_v36 }
  0xb1   : > { %2314 = vmatmul.msk.f32.gmra.mxu1 %vm732_vm1, %v671_v38 }
  0xb4   : > { %v490_v39 = vpop.f32.mrf.mxu0 }
  0xb5   : > { %v491_v41 = vadd.f32 %v2610_v18, %v490_v39 }
  0xb7   : > { %v672_v42 = vmax.f32 %v491_v41, 0.0  ;;  %2266 = vmatmul.msk.f32.gmra.mxu0 %vm262_vm0, %v209_v40  ;;  %v223_v41 = vld [vmem:[%s2569_s20 + $0x118] sm:$0xff] }
  0xb9   : > { %2315 = vmatmul.msk.f32.gmra.mxu1 %vm732_vm1, %v672_v42 }
  0xbc   : > { %v493_v43 = vpop.f32.mrf.mxu0 }
  0xbd   : > { %v494_v45 = vadd.f32 %v2610_v18, %v493_v43 }
  0xbf   : > { %v673_v46 = vmax.f32 %v494_v45, 0.0  ;;  %2267 = vmatmul.msk.f32.gmra.mxu0 %vm262_vm0, %v210_v44 }
  0xc1   : > { %2316 = vmatmul.msk.f32.gmra.mxu1 %vm732_vm1, %v673_v46 }
  0xc4   : > { %v496_v47 = vpop.f32.mrf.mxu0 }
  0xc5   : > { %v497_v49 = vadd.f32 %v2610_v18, %v496_v47  ;;  %v224_v47 = vld [vmem:[%s2569_s20 + $0x120] sm:$0xff] }
  0xc7   : > { %v674_v50 = vmax.f32 %v497_v49, 0.0  ;;  %2268 = vmatmul.msk.f32.gmra.mxu0 %vm262_vm0, %v211_v48 }
  0xc9   : > { %2317 = vmatmul.msk.f32.gmra.mxu1 %vm732_vm1, %v674_v50 }
  0xcc   : > { %v499_v51 = vpop.f32.mrf.mxu0 }
  0xcd   : > { %v500_v53 = vadd.f32 %v2610_v18, %v499_v51 }
  0xcf   : > { %v675_v54 = vmax.f32 %v500_v53, 0.0  ;;  %2269 = vmatmul.msk.f32.gmra.mxu0 %vm262_vm0, %v212_v52  ;;  %v225_v53 = vld [vmem:[%s2569_s20 + $0x128] sm:$0xff] }
  0xd1   : > { %2318 = vmatmul.msk.f32.gmra.mxu1 %vm732_vm1, %v675_v54 }
  0xd4   : > { %v502_v55 = vpop.f32.mrf.mxu0 }
  0xd5   : > { %v503_v57 = vadd.f32 %v2610_v18, %v502_v55 }
  0xd7   : > { %v676_v58 = vmax.f32 %v503_v57, 0.0  ;;  %2270 = vmatmul.msk.f32.gmra.mxu0 %vm262_vm0, %v213_v56 }
  0xd9   : > { %2319 = vmatmul.msk.f32.gmra.mxu1 %vm732_vm1, %v676_v58 }
  0xdc   : > { %v505_v59 = vpop.f32.mrf.mxu0 }
  0xdd   : > { %v506_v61 = vadd.f32 %v2610_v18, %v505_v59  ;;  %v226_v59 = vld [vmem:[%s2569_s20 + $0x130] sm:$0xff] }
  0xdf   : > { %v677_v62 = vmax.f32 %v506_v61, 0.0  ;;  %2271 = vmatmul.msk.f32.gmra.mxu0 %vm262_vm0, %v214_v60 }
  0xe1   : > { %2320 = vmatmul.msk.f32.gmra.mxu1 %vm732_vm1, %v677_v62 }
  0xe4   : > { %v508_v63 = vpop.f32.mrf.mxu0 }
  0xe5   : > { %v509_v1 = vadd.f32 %v2610_v18, %v508_v63 }
  0xe7   : > { %v678_v2 = vmax.f32 %v509_v1, 0.0  ;;  %2272 = vmatmul.msk.f32.gmra.mxu0 %vm262_vm0, %v215_v0  ;;  %v227_v1 = vld [vmem:[%s2569_s20 + $0x138] sm:$0xff] }
  0xe9   : > { %2321 = vmatmul.msk.f32.gmra.mxu1 %vm732_vm1, %v678_v2 }
  0xec   : > { %v511_v3 = vpop.f32.mrf.mxu0 }
  0xed   : > { %v512_v5 = vadd.f32 %v2610_v18, %v511_v3 }
  0xef   : > { %v679_v7 = vmax.f32 %v512_v5, 0.0  ;;  %2273 = vmatmul.msk.f32.gmra.mxu0 %vm262_vm0, %v216_v4 }
  0xf1   : > { %2322 = vmatmul.msk.f32.gmra.mxu1 %vm732_vm1, %v679_v7  ;;  %v228_v7 = vld [vmem:[%s2569_s20 + $0x140] sm:$0xff] }
  0xf4   : > { %v514_v8 = vpop.f32.mrf.mxu0 }
  0xf5   : > { %v515_v10 = vadd.f32 %v2610_v18, %v514_v8 }
  0xf7   : > { %v680_v11 = vmax.f32 %v515_v10, 0.0  ;;  %2274 = vmatmul.msk.f32.gmra.mxu0 %vm262_vm0, %v217_v9 }
  0xf9   : > { %2323 = vmatmul.msk.f32.gmra.mxu1 %vm732_vm1, %v680_v11 }
  0xfc   : > { %v517_v12 = vpop.f32.mrf.mxu0 }
  0xfd   : > { %v518_v14 = vadd.f32 %v2610_v18, %v517_v12 }
  0xff   : > { %v681_v15 = vmax.f32 %v518_v14, 0.0  ;;  %2275 = vmatmul.msk.f32.gmra.mxu0 %vm262_vm0, %v218_v13  ;;  %v229_v13 = vld [vmem:[%s2569_s20 + $0x148] sm:$0xff] }
 0x101   : > { %2324 = vmatmul.msk.f32.gmra.mxu1 %vm732_vm1, %v681_v15 }
 0x104   : > { %v520_v16 = vpop.f32.mrf.mxu0 }
 0x105   : > { %v521_v19 = vadd.f32 %v2610_v18, %v520_v16 }
 0x107   : > { %v682_v20 = vmax.f32 %v521_v19, 0.0  ;;  %2276 = vmatmul.msk.f32.gmra.mxu0 %vm262_vm0, %v219_v17 }
 0x109   : > { %2325 = vmatmul.msk.f32.gmra.mxu1 %vm732_vm1, %v682_v20  ;;  %v230_v20 = vld [vmem:[%s2569_s20 + $0x150] sm:$0xff] }
 0x10c   : > { %v523_v22 = vpop.f32.mrf.mxu0 }
 0x10d   : > { %v524_v24 = vadd.f32 %v2610_v18, %v523_v22 }
 0x10e   : > { %v945_v25 = vpop.f32.mrf.mxu1 }
 0x10f   : > { %v683_v26 = vmax.f32 %v524_v24, 0.0  ;;  %v946_v27 = vadd.f32 %v2683_v21, %v945_v25  ;;  %2277 = vmatmul.msk.f32.gmra.mxu0 %vm262_vm0, %v220_v23 }
 0x111   : > { %2015 = vst.msk [vmem:[%s2691_s4] sm:$0xff] %vm1138_vm2, %v946_v27  ;;  %2326 = vmatmul.msk.f32.gmra.mxu1 %vm732_vm1, %v683_v26  ;;  %2375 = vmatmul.msk.f32.vlgmr.msra.gmra.mxu2 %vm1138_vm2, %v946_v27  ;;  %v231_v27 = vld [vmem:[%s2569_s20 + $0x158] sm:$0xff] }
 0x114   : > { %v526_v28 = vpop.f32.mrf.mxu0 }
 0x115   : > { %v527_v30 = vadd.f32 %v2610_v18, %v526_v28 }
 0x116   : > { %v948_v31 = vpop.f32.mrf.mxu1 }
 0x117   : > { %v684_v32 = vmax.f32 %v527_v30, 0.0  ;;  %v949_v33 = vadd.f32 %v2683_v21, %v948_v31  ;;  %2278 = vmatmul.msk.f32.gmra.mxu0 %vm262_vm0, %v221_v29 }
 0x119   : > { %2016 = vst.msk [vmem:[%s2691_s4 + $0x8] sm:$0xff] %vm1138_vm2, %v949_v33  ;;  %2327 = vmatmul.msk.f32.gmra.mxu1 %vm732_vm1, %v684_v32  ;;  %2376 = vmatmul.msk.f32.gmra.mxu2 %vm1138_vm2, %v949_v33  ;;  %v232_v33 = vld [vmem:[%s2569_s20 + $0x160] sm:$0xff] }
 0x11c   : > { %v529_v34 = vpop.f32.mrf.mxu0 }
 0x11d   : > { %v530_v36 = vadd.f32 %v2610_v18, %v529_v34 }
 0x11e   : > { %v951_v37 = vpop.f32.mrf.mxu1 }
 0x11f   : > { %v685_v38 = vmax.f32 %v530_v36, 0.0  ;;  %v952_v39 = vadd.f32 %v2683_v21, %v951_v37  ;;  %2279 = vmatmul.msk.f32.gmra.mxu0 %vm262_vm0, %v222_v35 }
 0x121   : > { %2017 = vst.msk [vmem:[%s2691_s4 + $0x10] sm:$0xff] %vm1138_vm2, %v952_v39  ;;  %2328 = vmatmul.msk.f32.gmra.mxu1 %vm732_vm1, %v685_v38  ;;  %2377 = vmatmul.msk.f32.gmra.mxu2 %vm1138_vm2, %v952_v39  ;;  %v259_v38 = vld [vmem:[%s3458_s1 + $0x30] sm:$0xff] }
 0x122   : > { %2439 = vmatpush.xpose.msk.msra.mxu3 %vm732_vm1, %v259_v38 }
 0x124   : > { %v532_v40 = vpop.f32.mrf.mxu0 }
 0x125   : > { %v533_v42 = vadd.f32 %v2610_v18, %v532_v40  ;;  %v233_v40 = vld [vmem:[%s2569_s20 + $0x168] sm:$0xff] }
 0x126   : > { %v954_v43 = vpop.f32.mrf.mxu1 }
 0x127   : > { %v686_v44 = vmax.f32 %v533_v42, 0.0  ;;  %v955_v45 = vadd.f32 %v2683_v21, %v954_v43  ;;  %2280 = vmatmul.msk.f32.gmra.mxu0 %vm262_vm0, %v223_v41  ;;  %v258_v42 = vld [vmem:[%s3458_s1 + $0x28] sm:$0xff] }
 0x128   : > { %2440 = vmatpush.xpose.msk.msra.mxu3 %vm732_vm1, %v258_v42 }
 0x129   : > { %2018 = vst.msk [vmem:[%s2691_s4 + $0x18] sm:$0xff] %vm1138_vm2, %v955_v45  ;;  %2329 = vmatmul.msk.f32.gmra.mxu1 %vm732_vm1, %v686_v44  ;;  %2378 = vmatmul.msk.f32.gmra.mxu2 %vm1138_vm2, %v955_v45 }
 0x12c   : > { %v535_v46 = vpop.f32.mrf.mxu0 }
 0x12d   : > { %v536_v48 = vadd.f32 %v2610_v18, %v535_v46 }
 0x12e   : > { %v957_v49 = vpop.f32.mrf.mxu1 }
 0x12f   : > { %v687_v50 = vmax.f32 %v536_v48, 0.0  ;;  %v958_v51 = vadd.f32 %v2683_v21, %v957_v49  ;;  %2281 = vmatmul.msk.f32.gmra.mxu0 %vm262_vm0, %v224_v47  ;;  %v234_v47 = vld [vmem:[%s2569_s20 + $0x170] sm:$0xff] }
 0x131   : > { %2019 = vst.msk [vmem:[%s2691_s4 + $0x20] sm:$0xff] %vm1138_vm2, %v958_v51  ;;  %2330 = vmatmul.msk.f32.gmra.mxu1 %vm732_vm1, %v687_v50  ;;  %2379 = vmatmul.msk.f32.gmra.mxu2 %vm1138_vm2, %v958_v51 }
 0x134   : > { %v538_v52 = vpop.f32.mrf.mxu0 }
 0x135   : > { %v539_v54 = vadd.f32 %v2610_v18, %v538_v52 }
 0x136   : > { %v960_v55 = vpop.f32.mrf.mxu1 }
 0x137   : > { %v688_v56 = vmax.f32 %v539_v54, 0.0  ;;  %v961_v57 = vadd.f32 %v2683_v21, %v960_v55  ;;  %2282 = vmatmul.msk.f32.gmra.mxu0 %vm262_vm0, %v225_v53  ;;  %v235_v53 = vld [vmem:[%s2569_s20 + $0x178] sm:$0xff] }
 0x139   : > { %2020 = vst.msk [vmem:[%s2691_s4 + $0x28] sm:$0xff] %vm1138_vm2, %v961_v57  ;;  %2331 = vmatmul.msk.f32.gmra.mxu1 %vm732_vm1, %v688_v56  ;;  %2380 = vmatmul.msk.f32.gmra.mxu2 %vm1138_vm2, %v961_v57 }
 0x13c   : > { %v541_v58 = vpop.f32.mrf.mxu0 }
 0x13d   : > { %v542_v60 = vadd.f32 %v2610_v18, %v541_v58 }
 0x13e   : > { %v963_v61 = vpop.f32.mrf.mxu1 }
 0x13f   : > { %v689_v62 = vmax.f32 %v542_v60, 0.0  ;;  %v964_v63 = vadd.f32 %v2683_v21, %v963_v61  ;;  %2283 = vmatmul.msk.f32.gmra.mxu0 %vm262_vm0, %v226_v59  ;;  %v236_v59 = vld [vmem:[%s2569_s20 + $0x180] sm:$0xff] }
 0x141   : > { %2021 = vst.msk [vmem:[%s2691_s4 + $0x30] sm:$0xff] %vm1138_vm2, %v964_v63  ;;  %2332 = vmatmul.msk.f32.gmra.mxu1 %vm732_vm1, %v689_v62  ;;  %2381 = vmatmul.msk.f32.gmra.mxu2 %vm1138_vm2, %v964_v63 }
 0x144   : > { %v544_v0 = vpop.f32.mrf.mxu0 }
 0x145   : > { %v545_v2 = vadd.f32 %v2610_v18, %v544_v0  ;;  %v2838_v0 = vld [vmem:[%s3458_s1 + $0x20] ss:$0 sm:$0xff] }
 0x146   : > { %v966_v3 = vpop.f32.mrf.mxu1 }
 0x147   : > { %v690_v4 = vmax.f32 %v545_v2, 0.0  ;;  %v967_v5 = vadd.f32 %v2683_v21, %v966_v3  ;;  %2284 = vmatmul.msk.f32.gmra.mxu0 %vm262_vm0, %v227_v1  ;;  %v237_v3 = vld [vmem:[%s2569_s20 + $0x188] sm:$0xff] }
 0x149   : > { %2022 = vst.msk [vmem:[%s2691_s4 + $0x38] sm:$0xff] %vm1138_vm2, %v967_v5  ;;  %2333 = vmatmul.msk.f32.gmra.mxu1 %vm732_vm1, %v690_v4  ;;  %2382 = vmatmul.msk.f32.gmra.mxu2 %vm1138_vm2, %v967_v5 }
 0x14c   : > { %v547_v6 = vpop.f32.mrf.mxu0 }
 0x14d   : > { %v548_v8 = vadd.f32 %v2610_v18, %v547_v6 }
 0x14e   : > { %v969_v9 = vpop.f32.mrf.mxu1 }
 0x14f   : > { %v691_v10 = vmax.f32 %v548_v8, 0.0  ;;  %v970_v11 = vadd.f32 %v2683_v21, %v969_v9  ;;  %2285 = vmatmul.msk.f32.gmra.mxu0 %vm262_vm0, %v228_v7 }
 0x151   : > { %2023 = vst.msk [vmem:[%s2691_s4 + $0x40] sm:$0xff] %vm1138_vm2, %v970_v11  ;;  %2334 = vmatmul.msk.f32.gmra.mxu1 %vm732_vm1, %v691_v10  ;;  %2383 = vmatmul.msk.f32.gmra.mxu2 %vm1138_vm2, %v970_v11 }
 0x154   : > { %v550_v12 = vpop.f32.mrf.mxu0 }
 0x155   : > { %v551_v14 = vadd.f32 %v2610_v18, %v550_v12  ;;  %v238_v12 = vld [vmem:[%s2569_s20 + $0x190] sm:$0xff] }
 0x156   : > { %v972_v15 = vpop.f32.mrf.mxu1 }
 0x157   : > { %v692_v16 = vmax.f32 %v551_v14, 0.0  ;;  %v973_v17 = vadd.f32 %v2683_v21, %v972_v15  ;;  %2286 = vmatmul.msk.f32.gmra.mxu0 %vm262_vm0, %v229_v13 }
 0x159   : > { %2024 = vst.msk [vmem:[%s2691_s4 + $0x48] sm:$0xff] %vm1138_vm2, %v973_v17  ;;  %2335 = vmatmul.msk.f32.gmra.mxu1 %vm732_vm1, %v692_v16  ;;  %2384 = vmatmul.msk.f32.gmra.mxu2 %vm1138_vm2, %v973_v17 }
 0x15c   : > { %v553_v19 = vpop.f32.mrf.mxu0 }
 0x15d   : > { %v554_v22 = vadd.f32 %v2610_v18, %v553_v19 }
 0x15e   : > { %v975_v23 = vpop.f32.mrf.mxu1 }
 0x15f   : > { %v693_v24 = vmax.f32 %v554_v22, 0.0  ;;  %v976_v25 = vadd.f32 %v2683_v21, %v975_v23  ;;  %2287 = vmatmul.msk.f32.gmra.mxu0 %vm262_vm0, %v230_v20  ;;  %v239_v23 = vld [vmem:[%s2569_s20 + $0x198] sm:$0xff] }
 0x161   : > { %2025 = vst.msk [vmem:[%s2691_s4 + $0x50] sm:$0xff] %vm1138_vm2, %v976_v25  ;;  %2336 = vmatmul.msk.f32.gmra.mxu1 %vm732_vm1, %v693_v24  ;;  %2385 = vmatmul.msk.f32.gmra.mxu2 %vm1138_vm2, %v976_v25 }
 0x164   : > { %v556_v26 = vpop.f32.mrf.mxu0 }
 0x165   : > { %v557_v28 = vadd.f32 %v2610_v18, %v556_v26 }
 0x166   : > { %v978_v29 = vpop.f32.mrf.mxu1 }
 0x167   : > { %v694_v30 = vmax.f32 %v557_v28, 0.0  ;;  %v979_v31 = vadd.f32 %v2683_v21, %v978_v29  ;;  %2288 = vmatmul.msk.f32.gmra.mxu0 %vm262_vm0, %v231_v27 }
 0x169   : > { %2026 = vst.msk [vmem:[%s2691_s4 + $0x58] sm:$0xff] %vm1138_vm2, %v979_v31  ;;  %2337 = vmatmul.msk.f32.gmra.mxu1 %vm732_vm1, %v694_v30  ;;  %2386 = vmatmul.msk.f32.gmra.mxu2 %vm1138_vm2, %v979_v31 }
 0x16c   : > { %v559_v32 = vpop.f32.mrf.mxu0 }
 0x16d   : > { %v560_v34 = vadd.f32 %v2610_v18, %v559_v32  ;;  %v240_v32 = vld [vmem:[%s2569_s20 + $0x1a0] sm:$0xff] }
 0x16e   : > { %v981_v35 = vpop.f32.mrf.mxu1 }
 0x16f   : > { %v695_v36 = vmax.f32 %v560_v34, 0.0  ;;  %v982_v37 = vadd.f32 %v2683_v21, %v981_v35  ;;  %2289 = vmatmul.msk.f32.gmra.mxu0 %vm262_vm0, %v232_v33 }
 0x171   : > { %2027 = vst.msk [vmem:[%s2691_s4 + $0x60] sm:$0xff] %vm1138_vm2, %v982_v37  ;;  %2338 = vmatmul.msk.f32.gmra.mxu1 %vm732_vm1, %v695_v36  ;;  %2387 = vmatmul.msk.f32.gmra.mxu2 %vm1138_vm2, %v982_v37 }
 0x174   : > { %v562_v39 = vpop.f32.mrf.mxu0 }
 0x175   : > { %v563_v41 = vadd.f32 %v2610_v18, %v562_v39 }
 0x176   : > { %v984_v43 = vpop.f32.mrf.mxu1 }
 0x177   : > { %v696_v44 = vmax.f32 %v563_v41, 0.0  ;;  %v985_v45 = vadd.f32 %v2683_v21, %v984_v43  ;;  %2290 = vmatmul.msk.f32.gmra.mxu0 %vm262_vm0, %v233_v40  ;;  %v241_v41 = vld [vmem:[%s2569_s20 + $0x1a8] sm:$0xff] }
 0x179   : > { %2028 = vst.msk [vmem:[%s2691_s4 + $0x68] sm:$0xff] %vm1138_vm2, %v985_v45  ;;  %2339 = vmatmul.msk.f32.gmra.mxu1 %vm732_vm1, %v696_v44  ;;  %2388 = vmatmul.msk.f32.gmra.mxu2 %vm1138_vm2, %v985_v45 }
 0x17c   : > { %v565_v46 = vpop.f32.mrf.mxu0 }
 0x17d   : > { %v566_v48 = vadd.f32 %v2610_v18, %v565_v46 }
 0x17e   : > { %v987_v49 = vpop.f32.mrf.mxu1 }
 0x17f   : > { %v697_v50 = vmax.f32 %v566_v48, 0.0  ;;  %v988_v51 = vadd.f32 %v2683_v21, %v987_v49  ;;  %2291 = vmatmul.msk.f32.gmra.mxu0 %vm262_vm0, %v234_v47 }
 0x181   : > { %2029 = vst.msk [vmem:[%s2691_s4 + $0x70] sm:$0xff] %vm1138_vm2, %v988_v51  ;;  %2340 = vmatmul.msk.f32.gmra.mxu1 %vm732_vm1, %v697_v50  ;;  %2389 = vmatmul.msk.f32.gmra.mxu2 %vm1138_vm2, %v988_v51  ;;  %v242_v50 = vld [vmem:[%s2569_s20 + $0x1b0] sm:$0xff] }
 0x184   : > { %v568_v52 = vpop.f32.mrf.mxu0 }
 0x185   : > { %v569_v54 = vadd.f32 %v2610_v18, %v568_v52 }
 0x186   : > { %v990_v55 = vpop.f32.mrf.mxu1 }
 0x187   : > { %v698_v56 = vmax.f32 %v569_v54, 0.0  ;;  %v991_v57 = vadd.f32 %v2683_v21, %v990_v55  ;;  %2292 = vmatmul.msk.f32.gmra.mxu0 %vm262_vm0, %v235_v53 }
 0x189   : > { %2030 = vst.msk [vmem:[%s2691_s4 + $0x78] sm:$0xff] %vm1138_vm2, %v991_v57  ;;  %2341 = vmatmul.msk.f32.gmra.mxu1 %vm732_vm1, %v698_v56  ;;  %2390 = vmatmul.msk.f32.gmra.mxu2 %vm1138_vm2, %v991_v57 }
 0x18c   : > { %v571_v58 = vpop.f32.mrf.mxu0 }
 0x18d   : > { %v572_v60 = vadd.f32 %v2610_v18, %v571_v58 }
 0x18e   : > { %v993_v61 = vpop.f32.mrf.mxu1 }
 0x18f   : > { %v699_v62 = vmax.f32 %v572_v60, 0.0  ;;  %v994_v63 = vadd.f32 %v2683_v21, %v993_v61  ;;  %2293 = vmatmul.msk.f32.gmra.mxu0 %vm262_vm0, %v236_v59  ;;  %v243_v59 = vld [vmem:[%s2569_s20 + $0x1b8] sm:$0xff] }
 0x191   : > { %2031 = vst.msk [vmem:[%s2691_s4 + $0x80] sm:$0xff] %vm1138_vm2, %v994_v63  ;;  %2342 = vmatmul.msk.f32.gmra.mxu1 %vm732_vm1, %v699_v62  ;;  %2391 = vmatmul.msk.f32.gmra.mxu2 %vm1138_vm2, %v994_v63 }
 0x194   : > { %v574_v1 = vpop.f32.mrf.mxu0  ;;  %v1351_v2 = vpop.f32.mrf.mxu2 }
 0x195   : > { %v575_v4 = vadd.f32 %v2610_v18, %v574_v1  ;;  %v1352_v5 = vadd.f32 %v2838_v0, %v1351_v2 }
 0x196   : > { %v996_v6 = vpop.f32.mrf.mxu1 }
 0x197   : > { %v700_v7 = vmax.f32 %v575_v4, 0.0  ;;  %v1543_v8 = vmax.f32 %v1352_v5, 0.0  ;;  %v997_v9 = vadd.f32 %v2683_v21, %v996_v6  ;;  %2294 = vmatmul.msk.f32.gmra.mxu0 %vm262_vm0, %v237_v3  ;;  %v244_v5 = vld [vmem:[%s2569_s20 + $0x1c0] sm:$0xff] }
 0x199   : > { %2032 = vst.msk [vmem:[%s2691_s4 + $0x88] sm:$0xff] %vm1138_vm2, %v997_v9  ;;  %2343 = vmatmul.msk.f32.gmra.mxu1 %vm732_vm1, %v700_v7  ;;  %2392 = vmatmul.msk.f32.gmra.mxu2 %vm1138_vm2, %v997_v9 }
 0x19a   : > { %2441 = vmatmul.msk.f32.vlgmr.msra.gmra.mxu3 %vm732_vm1, %v1543_v8 }
 0x19c   : > { %v577_v10 = vpop.f32.mrf.mxu0  ;;  %v1354_v11 = vpop.f32.mrf.mxu2 }
 0x19d   : > { %v578_v13 = vadd.f32 %v2610_v18, %v577_v10  ;;  %v1355_v14 = vadd.f32 %v2838_v0, %v1354_v11 }
 0x19e   : > { %v999_v15 = vpop.f32.mrf.mxu1 }
 0x19f   : > { %v701_v16 = vmax.f32 %v578_v13, 0.0  ;;  %v1544_v17 = vmax.f32 %v1355_v14, 0.0  ;;  %v1000_v19 = vadd.f32 %v2683_v21, %v999_v15  ;;  %2295 = vmatmul.msk.f32.gmra.mxu0 %vm262_vm0, %v238_v12  ;;  %v245_v14 = vld [vmem:[%s2569_s20 + $0x1c8] sm:$0xff] }
 0x1a1   : > { %2033 = vst.msk [vmem:[%s2691_s4 + $0x90] sm:$0xff] %vm1138_vm2, %v1000_v19  ;;  %2344 = vmatmul.msk.f32.gmra.mxu1 %vm732_vm1, %v701_v16  ;;  %2393 = vmatmul.msk.f32.gmra.mxu2 %vm1138_vm2, %v1000_v19 }
 0x1a2   : > { %2442 = vmatmul.msk.f32.gmra.mxu3 %vm732_vm1, %v1544_v17 }
 0x1a4   : > { %v580_v20 = vpop.f32.mrf.mxu0  ;;  %v1357_v22 = vpop.f32.mrf.mxu2 }
 0x1a5   : > { %v581_v24 = vadd.f32 %v2610_v18, %v580_v20  ;;  %v1358_v25 = vadd.f32 %v2838_v0, %v1357_v22 }
 0x1a6   : > { %v1002_v26 = vpop.f32.mrf.mxu1 }
 0x1a7   : > { %v702_v27 = vmax.f32 %v581_v24, 0.0  ;;  %v1545_v28 = vmax.f32 %v1358_v25, 0.0  ;;  %v1003_v29 = vadd.f32 %v2683_v21, %v1002_v26  ;;  %2296 = vmatmul.msk.f32.gmra.mxu0 %vm262_vm0, %v239_v23  ;;  %v246_v25 = vld [vmem:[%s2569_s20 + $0x1d0] sm:$0xff] }
 0x1a9   : > { %2034 = vst.msk [vmem:[%s2691_s4 + $0x98] sm:$0xff] %vm1138_vm2, %v1003_v29  ;;  %2345 = vmatmul.msk.f32.gmra.mxu1 %vm732_vm1, %v702_v27  ;;  %2394 = vmatmul.msk.f32.gmra.mxu2 %vm1138_vm2, %v1003_v29 }
 0x1aa   : > { %2443 = vmatmul.msk.f32.gmra.mxu3 %vm732_vm1, %v1545_v28 }
 0x1ac   : > { %v583_v30 = vpop.f32.mrf.mxu0  ;;  %v1360_v31 = vpop.f32.mrf.mxu2 }
 0x1ad   : > { %v584_v33 = vadd.f32 %v2610_v18, %v583_v30  ;;  %v1361_v34 = vadd.f32 %v2838_v0, %v1360_v31 }
 0x1ae   : > { %v1005_v35 = vpop.f32.mrf.mxu1 }
 0x1af   : > { %v703_v36 = vmax.f32 %v584_v33, 0.0  ;;  %v1546_v37 = vmax.f32 %v1361_v34, 0.0  ;;  %v1006_v38 = vadd.f32 %v2683_v21, %v1005_v35  ;;  %2297 = vmatmul.msk.f32.gmra.mxu0 %vm262_vm0, %v240_v32  ;;  %v247_v34 = vld [vmem:[%s2569_s20 + $0x1d8] sm:$0xff] }
 0x1b1   : > { %2035 = vst.msk [vmem:[%s2691_s4 + $0xa0] sm:$0xff] %vm1138_vm2, %v1006_v38  ;;  %2346 = vmatmul.msk.f32.gmra.mxu1 %vm732_vm1, %v703_v36  ;;  %2395 = vmatmul.msk.f32.gmra.mxu2 %vm1138_vm2, %v1006_v38 }
 0x1b2   : > { %2444 = vmatmul.msk.f32.gmra.mxu3 %vm732_vm1, %v1546_v37 }
 0x1b4   : > { %v586_v39 = vpop.f32.mrf.mxu0  ;;  %v1363_v40 = vpop.f32.mrf.mxu2 }
 0x1b5   : > { %v587_v42 = vadd.f32 %v2610_v18, %v586_v39  ;;  %v1364_v43 = vadd.f32 %v2838_v0, %v1363_v40 }
 0x1b6   : > { %v1008_v44 = vpop.f32.mrf.mxu1 }
 0x1b7   : > { %v704_v45 = vmax.f32 %v587_v42, 0.0  ;;  %v1547_v46 = vmax.f32 %v1364_v43, 0.0  ;;  %v1009_v47 = vadd.f32 %v2683_v21, %v1008_v44  ;;  %2298 = vmatmul.msk.f32.gmra.mxu0 %vm262_vm0, %v241_v41  ;;  %v248_v43 = vld [vmem:[%s2569_s20 + $0x1e0] sm:$0xff] }
 0x1b9   : > { %2036 = vst.msk [vmem:[%s2691_s4 + $0xa8] sm:$0xff] %vm1138_vm2, %v1009_v47  ;;  %2347 = vmatmul.msk.f32.gmra.mxu1 %vm732_vm1, %v704_v45  ;;  %2396 = vmatmul.msk.f32.gmra.mxu2 %vm1138_vm2, %v1009_v47 }
 0x1ba   : > { %2445 = vmatmul.msk.f32.gmra.mxu3 %vm732_vm1, %v1547_v46 }
 0x1bc   : > { %v589_v48 = vpop.f32.mrf.mxu0  ;;  %v1366_v49 = vpop.f32.mrf.mxu2 }
 0x1bd   : > { %v590_v51 = vadd.f32 %v2610_v18, %v589_v48  ;;  %v1367_v52 = vadd.f32 %v2838_v0, %v1366_v49 }
 0x1be   : > { %v1011_v53 = vpop.f32.mrf.mxu1 }
 0x1bf   : > { %v705_v54 = vmax.f32 %v590_v51, 0.0  ;;  %v1548_v55 = vmax.f32 %v1367_v52, 0.0  ;;  %v1012_v56 = vadd.f32 %v2683_v21, %v1011_v53  ;;  %2299 = vmatmul.msk.f32.gmra.mxu0 %vm262_vm0, %v242_v50  ;;  %v249_v52 = vld [vmem:[%s2569_s20 + $0x1e8] sm:$0xff] }
 0x1c1   : > { %2037 = vst.msk [vmem:[%s2691_s4 + $0xb0] sm:$0xff] %vm1138_vm2, %v1012_v56  ;;  %2348 = vmatmul.msk.f32.gmra.mxu1 %vm732_vm1, %v705_v54  ;;  %2397 = vmatmul.msk.f32.gmra.mxu2 %vm1138_vm2, %v1012_v56 }
 0x1c2   : > { %2446 = vmatmul.msk.f32.gmra.mxu3 %vm732_vm1, %v1548_v55 }
 0x1c4   : > { %v592_v57 = vpop.f32.mrf.mxu0  ;;  %v1369_v58 = vpop.f32.mrf.mxu2 }
 0x1c5   : > { %v593_v60 = vadd.f32 %v2610_v18, %v592_v57  ;;  %v1370_v61 = vadd.f32 %v2838_v0, %v1369_v58 }
 0x1c6   : > { %v1014_v62 = vpop.f32.mrf.mxu1 }
 0x1c7   : > { %v706_v63 = vmax.f32 %v593_v60, 0.0  ;;  %v1549_v1 = vmax.f32 %v1370_v61, 0.0  ;;  %v1015_v2 = vadd.f32 %v2683_v21, %v1014_v62  ;;  %2300 = vmatmul.msk.f32.gmra.mxu0 %vm262_vm0, %v243_v59  ;;  %v250_v61 = vld [vmem:[%s2569_s20 + $0x1f0] sm:$0xff] }
 0x1c9   : > { %2038 = vst.msk [vmem:[%s2691_s4 + $0xb8] sm:$0xff] %vm1138_vm2, %v1015_v2  ;;  %2349 = vmatmul.msk.f32.gmra.mxu1 %vm732_vm1, %v706_v63  ;;  %2398 = vmatmul.msk.f32.gmra.mxu2 %vm1138_vm2, %v1015_v2 }
 0x1ca   : > { %2447 = vmatmul.msk.f32.gmra.mxu3 %vm732_vm1, %v1549_v1 }
 0x1cc   : > { %v595_v3 = vpop.f32.mrf.mxu0  ;;  %v1372_v4 = vpop.f32.mrf.mxu2 }
 0x1cd   : > { %v596_v6 = vadd.f32 %v2610_v18, %v595_v3  ;;  %v1373_v7 = vadd.f32 %v2838_v0, %v1372_v4 }
 0x1ce   : > { %v1017_v8 = vpop.f32.mrf.mxu1 }
 0x1cf   : > { %v707_v9 = vmax.f32 %v596_v6, 0.0  ;;  %v1550_v10 = vmax.f32 %v1373_v7, 0.0  ;;  %v1018_v11 = vadd.f32 %v2683_v21, %v1017_v8  ;;  %2301 = vmatmul.msk.f32.gmra.mxu0 %vm262_vm0, %v244_v5  ;;  %v251_v7 = vld [vmem:[%s2569_s20 + $0x1f8] sm:$0xff] }
 0x1d1   : > { %2039 = vst.msk [vmem:[%s2691_s4 + $0xc0] sm:$0xff] %vm1138_vm2, %v1018_v11  ;;  %2350 = vmatmul.msk.f32.gmra.mxu1 %vm732_vm1, %v707_v9  ;;  %2399 = vmatmul.msk.f32.gmra.mxu2 %vm1138_vm2, %v1018_v11 }
 0x1d2   : > { %2448 = vmatmul.msk.f32.gmra.mxu3 %vm732_vm1, %v1550_v10 }
 0x1d4   : > { %v598_v12 = vpop.f32.mrf.mxu0  ;;  %v1375_v13 = vpop.f32.mrf.mxu2 }
 0x1d5   : > { %v599_v15 = vadd.f32 %v2610_v18, %v598_v12  ;;  %v1376_v16 = vadd.f32 %v2838_v0, %v1375_v13 }
 0x1d6   : > { %v1020_v17 = vpop.f32.mrf.mxu1 }
 0x1d7   : > { %v708_v19 = vmax.f32 %v599_v15, 0.0  ;;  %v1551_v20 = vmax.f32 %v1376_v16, 0.0  ;;  %v1021_v22 = vadd.f32 %v2683_v21, %v1020_v17  ;;  %2302 = vmatmul.msk.f32.gmra.mxu0 %vm262_vm0, %v245_v14 }
 0x1d9   : > { %2040 = vst.msk [vmem:[%s2691_s4 + $0xc8] sm:$0xff] %vm1138_vm2, %v1021_v22  ;;  %2351 = vmatmul.msk.f32.gmra.mxu1 %vm732_vm1, %v708_v19  ;;  %2400 = vmatmul.msk.f32.gmra.mxu2 %vm1138_vm2, %v1021_v22 }
 0x1da   : > { %2449 = vmatmul.msk.f32.gmra.mxu3 %vm732_vm1, %v1551_v20 }
 0x1dc   : > { %v601_v23 = vpop.f32.mrf.mxu0  ;;  %v1378_v24 = vpop.f32.mrf.mxu2 }
 0x1dd   : > { %v602_v26 = vadd.f32 %v2610_v18, %v601_v23  ;;  %v1379_v27 = vadd.f32 %v2838_v0, %v1378_v24 }
 0x1de   : > { %v1023_v28 = vpop.f32.mrf.mxu1 }
 0x1df   : > { %v709_v29 = vmax.f32 %v602_v26, 0.0  ;;  %v1552_v30 = vmax.f32 %v1379_v27, 0.0  ;;  %v1024_v31 = vadd.f32 %v2683_v21, %v1023_v28  ;;  %2303 = vmatmul.msk.f32.gmra.mxu0 %vm262_vm0, %v246_v25 }
 0x1e1   : > { %2041 = vst.msk [vmem:[%s2691_s4 + $0xd0] sm:$0xff] %vm1138_vm2, %v1024_v31  ;;  %2352 = vmatmul.msk.f32.gmra.mxu1 %vm732_vm1, %v709_v29  ;;  %2401 = vmatmul.msk.f32.gmra.mxu2 %vm1138_vm2, %v1024_v31 }
 0x1e2   : > { %2450 = vmatmul.msk.f32.gmra.mxu3 %vm732_vm1, %v1552_v30 }
 0x1e4   : > { %v604_v32 = vpop.f32.mrf.mxu0  ;;  %v1381_v33 = vpop.f32.mrf.mxu2 }
 0x1e5   : > { %v605_v35 = vadd.f32 %v2610_v18, %v604_v32  ;;  %v1382_v36 = vadd.f32 %v2838_v0, %v1381_v33 }
 0x1e6   : > { %v1026_v37 = vpop.f32.mrf.mxu1 }
 0x1e7   : > { %v710_v38 = vmax.f32 %v605_v35, 0.0  ;;  %v1553_v39 = vmax.f32 %v1382_v36, 0.0  ;;  %v1027_v40 = vadd.f32 %v2683_v21, %v1026_v37  ;;  %2304 = vmatmul.msk.f32.gmra.mxu0 %vm262_vm0, %v247_v34  ;;  %v3014_v34 = vld [vmem:[%s3458_s1 + $0x8] ss:$0 sm:$0xff] }
 0x1e9   : > { %2042 = vst.msk [vmem:[%s2691_s4 + $0xd8] sm:$0xff] %vm1138_vm2, %v1027_v40  ;;  %2353 = vmatmul.msk.f32.gmra.mxu1 %vm732_vm1, %v710_v38  ;;  %2402 = vmatmul.msk.f32.gmra.mxu2 %vm1138_vm2, %v1027_v40 }
 0x1ea   : > { %2451 = vmatmul.msk.f32.gmra.mxu3 %vm732_vm1, %v1553_v39 }
 0x1ec   : > { %v607_v41 = vpop.f32.mrf.mxu0  ;;  %v1384_v42 = vpop.f32.mrf.mxu2 }
 0x1ed   : > { %v608_v44 = vadd.f32 %v2610_v18, %v607_v41  ;;  %v1385_v45 = vadd.f32 %v2838_v0, %v1384_v42 }
 0x1ee   : > { %v1029_v46 = vpop.f32.mrf.mxu1 }
 0x1ef   : > { %v711_v47 = vmax.f32 %v608_v44, 0.0  ;;  %v1554_v48 = vmax.f32 %v1385_v45, 0.0  ;;  %v1030_v49 = vadd.f32 %v2683_v21, %v1029_v46  ;;  %2305 = vmatmul.msk.f32.gmra.mxu0 %vm262_vm0, %v248_v43 }
 0x1f1   : > { %2043 = vst.msk [vmem:[%s2691_s4 + $0xe0] sm:$0xff] %vm1138_vm2, %v1030_v49  ;;  %2354 = vmatmul.msk.f32.gmra.mxu1 %vm732_vm1, %v711_v47  ;;  %2403 = vmatmul.msk.f32.gmra.mxu2 %vm1138_vm2, %v1030_v49 }
 0x1f2   : > { %2452 = vmatmul.msk.f32.gmra.mxu3 %vm732_vm1, %v1554_v48 }
 0x1f4   : > { %v610_v50 = vpop.f32.mrf.mxu0  ;;  %v1387_v51 = vpop.f32.mrf.mxu2 }
 0x1f5   : > { %v611_v53 = vadd.f32 %v2610_v18, %v610_v50  ;;  %v1388_v54 = vadd.f32 %v2838_v0, %v1387_v51 }
 0x1f6   : > { %v1032_v55 = vpop.f32.mrf.mxu1 }
 0x1f7   : > { %v712_v56 = vmax.f32 %v611_v53, 0.0  ;;  %v1555_v57 = vmax.f32 %v1388_v54, 0.0  ;;  %v1033_v58 = vadd.f32 %v2683_v21, %v1032_v55  ;;  %2306 = vmatmul.msk.f32.gmra.mxu0 %vm262_vm0, %v249_v52 }
 0x1f9   : > { %2044 = vst.msk [vmem:[%s2691_s4 + $0xe8] sm:$0xff] %vm1138_vm2, %v1033_v58  ;;  %2355 = vmatmul.msk.f32.gmra.mxu1 %vm732_vm1, %v712_v56  ;;  %2404 = vmatmul.msk.f32.gmra.mxu2 %vm1138_vm2, %v1033_v58 }
 0x1fa   : > { %2453 = vmatmul.msk.f32.gmra.mxu3 %vm732_vm1, %v1555_v57 }
 0x1fc   : > { %v613_v59 = vpop.f32.mrf.mxu0  ;;  %v1390_v60 = vpop.f32.mrf.mxu2 }
 0x1fd   : > { %v614_v62 = vadd.f32 %v2610_v18, %v613_v59  ;;  %v1391_v63 = vadd.f32 %v2838_v0, %v1390_v60 }
 0x1fe   : > { %v1035_v1 = vpop.f32.mrf.mxu1 }
 0x1ff   : > { %v713_v2 = vmax.f32 %v614_v62, 0.0  ;;  %v1556_v3 = vmax.f32 %v1391_v63, 0.0  ;;  %v1036_v4 = vadd.f32 %v2683_v21, %v1035_v1  ;;  %2307 = vmatmul.msk.f32.gmra.mxu0 %vm262_vm0, %v250_v61 }
 0x201   : > { %2045 = vst.msk [vmem:[%s2691_s4 + $0xf0] sm:$0xff] %vm1138_vm2, %v1036_v4  ;;  %2356 = vmatmul.msk.f32.gmra.mxu1 %vm732_vm1, %v713_v2  ;;  %2405 = vmatmul.msk.f32.gmra.mxu2 %vm1138_vm2, %v1036_v4 }
 0x202   : > { %2454 = vmatmul.msk.f32.gmra.mxu3 %vm732_vm1, %v1556_v3 }
 0x204   : > { %v616_v5 = vpop.f32.mrf.mxu0  ;;  %v1393_v6 = vpop.f32.mrf.mxu2 }
 0x205   : > { %v617_v8 = vadd.f32 %v2610_v18, %v616_v5  ;;  %v1394_v9 = vadd.f32 %v2838_v0, %v1393_v6 }
 0x206   : > { %v1038_v10 = vpop.f32.mrf.mxu1 }
 0x207   : > { %v714_v11 = vmax.f32 %v617_v8, 0.0  ;;  %v1557_v12 = vmax.f32 %v1394_v9, 0.0  ;;  %v1039_v13 = vadd.f32 %v2683_v21, %v1038_v10  ;;  %2308 = vmatmul.msk.f32.gmra.mxu0 %vm262_vm0, %v251_v7 }
 0x209   : > { %2046 = vst.msk [vmem:[%s2691_s4 + $0xf8] sm:$0xff] %vm1138_vm2, %v1039_v13  ;;  %2357 = vmatmul.msk.f32.gmra.mxu1 %vm732_vm1, %v714_v11  ;;  %2406 = vmatmul.msk.f32.gmra.mxu2 %vm1138_vm2, %v1039_v13 }
 0x20a   : > { %2455 = vmatmul.msk.f32.gmra.mxu3 %vm732_vm1, %v1557_v12 }
 0x20c   : > { %v619_v14 = vpop.f32.mrf.mxu0  ;;  %v1396_v15 = vpop.f32.mrf.mxu2 }
 0x20d   : > { %v620_v16 = vadd.f32 %v2610_v18, %v619_v14  ;;  %v1397_v17 = vadd.f32 %v2838_v0, %v1396_v15 }
 0x20e   : > { %v1041_v19 = vpop.f32.mrf.mxu1 }
 0x20f   : > { %v715_v20 = vmax.f32 %v620_v16, 0.0  ;;  %v1558_v22 = vmax.f32 %v1397_v17, 0.0  ;;  %v1042_v23 = vadd.f32 %v2683_v21, %v1041_v19 }
 0x211   : > { %2047 = vst.msk [vmem:[%s2691_s4 + $0x100] sm:$0xff] %vm1138_vm2, %v1042_v23  ;;  %2358 = vmatmul.msk.f32.gmra.mxu1 %vm732_vm1, %v715_v20  ;;  %2407 = vmatmul.msk.f32.gmra.mxu2 %vm1138_vm2, %v1042_v23 }
 0x212   : > { %2456 = vmatmul.msk.f32.gmra.mxu3 %vm732_vm1, %v1558_v22 }
 0x214   : > { %v622_v24 = vpop.f32.mrf.mxu0  ;;  %v1399_v25 = vpop.f32.mrf.mxu2 }
 0x215   : > { %v623_v26 = vadd.f32 %v2610_v18, %v622_v24  ;;  %v1400_v27 = vadd.f32 %v2838_v0, %v1399_v25  ;;  %v3009_v18 = vld [vmem:[%s3458_s1 + $0x38] ss:$0 sm:$0xff] }
 0x216   : > { %v1044_v28 = vpop.f32.mrf.mxu1 }
 0x217   : > { %v716_v29 = vmax.f32 %v623_v26, 0.0  ;;  %v1559_v30 = vmax.f32 %v1400_v27, 0.0  ;;  %v1045_v31 = vadd.f32 %v2683_v21, %v1044_v28 }
 0x219   : > { %2048 = vst.msk [vmem:[%s2691_s4 + $0x108] sm:$0xff] %vm1138_vm2, %v1045_v31  ;;  %2359 = vmatmul.msk.f32.gmra.mxu1 %vm732_vm1, %v716_v29  ;;  %2408 = vmatmul.msk.f32.gmra.mxu2 %vm1138_vm2, %v1045_v31 }
 0x21a   : > { %2457 = vmatmul.msk.f32.gmra.mxu3 %vm732_vm1, %v1559_v30 }
 0x21c   : > { %v625_v32 = vpop.f32.mrf.mxu0  ;;  %v1402_v33 = vpop.f32.mrf.mxu2 }
 0x21d   : > { %v626_v35 = vadd.f32 %v3014_v34, %v625_v32  ;;  %v1403_v36 = vadd.f32 %v2838_v0, %v1402_v33  ;;  %v1823_v37 = vpop.f32.mrf.mxu3 }
 0x21e   : > { %v1824_v38 = vadd.f32 %v3009_v18, %v1823_v37  ;;  %v1047_v39 = vpop.f32.mrf.mxu1 }
 0x21f   : > { %v717_v40 = vmax.f32 %v626_v35, 0.0  ;;  %v1560_v41 = vmax.f32 %v1403_v36, 0.0  ;;  %v1048_v42 = vadd.f32 %v2683_v21, %v1047_v39 }
 0x220   : > { %2079 = vst.msk [vmem:[%s3022_s19] sm:$0xff] %vm262_vm0, %v1824_v38 }
 0x221   : > { %2049 = vst.msk [vmem:[%s2691_s4 + $0x110] sm:$0xff] %vm1138_vm2, %v1048_v42  ;;  %2360 = vmatmul.msk.f32.gmra.mxu1 %vm732_vm1, %v717_v40  ;;  %2409 = vmatmul.msk.f32.gmra.mxu2 %vm1138_vm2, %v1048_v42 }
 0x222   : > { %2458 = vmatmul.msk.f32.gmra.mxu3 %vm732_vm1, %v1560_v41  ;;  %v3094_v41 = vld [vmem:[%s3458_s1 + $0x13] ss:$0 sm:$0xff] }
 0x224   : > { %v628_v43 = vpop.f32.mrf.mxu0  ;;  %v1405_v44 = vpop.f32.mrf.mxu2 }
 0x225   : > { %v629_v45 = vadd.f32 %v3014_v34, %v628_v43  ;;  %v1406_v46 = vadd.f32 %v2838_v0, %v1405_v44  ;;  %v1826_v47 = vpop.f32.mrf.mxu3 }
 0x226   : > { %v1827_v48 = vadd.f32 %v3009_v18, %v1826_v47  ;;  %v1050_v49 = vpop.f32.mrf.mxu1 }
 0x227   : > { %v718_v50 = vmax.f32 %v629_v45, 0.0  ;;  %v1561_v51 = vmax.f32 %v1406_v46, 0.0  ;;  %v1051_v52 = vadd.f32 %v2683_v21, %v1050_v49 }
 0x228   : > { %2080 = vst.msk [vmem:[%s3022_s19 + $0x8] sm:$0xff] %vm262_vm0, %v1827_v48 }
 0x229   : > { %2050 = vst.msk [vmem:[%s2691_s4 + $0x118] sm:$0xff] %vm1138_vm2, %v1051_v52  ;;  %2361 = vmatmul.msk.f32.gmra.mxu1 %vm732_vm1, %v718_v50  ;;  %2410 = vmatmul.msk.f32.gmra.mxu2 %vm1138_vm2, %v1051_v52 }
 0x22a   : > { %2459 = vmatmul.msk.f32.gmra.mxu3 %vm732_vm1, %v1561_v51 }
 0x22c   : > { %v631_v53 = vpop.f32.mrf.mxu0  ;;  %v1408_v54 = vpop.f32.mrf.mxu2 }
 0x22d   : > { %v632_v55 = vadd.f32 %v3014_v34, %v631_v53  ;;  %v1409_v56 = vadd.f32 %v2838_v0, %v1408_v54  ;;  %v1829_v57 = vpop.f32.mrf.mxu3 }
 0x22e   : > { %v1830_v58 = vadd.f32 %v3009_v18, %v1829_v57  ;;  %v1053_v59 = vpop.f32.mrf.mxu1 }
 0x22f   : > { %v719_v60 = vmax.f32 %v632_v55, 0.0  ;;  %v1562_v61 = vmax.f32 %v1409_v56, 0.0  ;;  %v1054_v62 = vadd.f32 %v2683_v21, %v1053_v59 }
 0x230   : > { %2081 = vst.msk [vmem:[%s3022_s19 + $0x10] sm:$0xff] %vm262_vm0, %v1830_v58 }
 0x231   : > { %2051 = vst.msk [vmem:[%s2691_s4 + $0x120] sm:$0xff] %vm1138_vm2, %v1054_v62  ;;  %2362 = vmatmul.msk.f32.gmra.mxu1 %vm732_vm1, %v719_v60  ;;  %2411 = vmatmul.msk.f32.gmra.mxu2 %vm1138_vm2, %v1054_v62 }
 0x232   : > { %2460 = vmatmul.msk.f32.gmra.mxu3 %vm732_vm1, %v1562_v61 }
 0x234   : > { %v634_v63 = vpop.f32.mrf.mxu0  ;;  %v1411_v1 = vpop.f32.mrf.mxu2 }
 0x235   : > { %v635_v2 = vadd.f32 %v3014_v34, %v634_v63  ;;  %v1412_v3 = vadd.f32 %v2838_v0, %v1411_v1  ;;  %v1832_v4 = vpop.f32.mrf.mxu3 }
 0x236   : > { %v1833_v5 = vadd.f32 %v3009_v18, %v1832_v4  ;;  %v1056_v6 = vpop.f32.mrf.mxu1 }
 0x237   : > { %v720_v7 = vmax.f32 %v635_v2, 0.0  ;;  %v1563_v8 = vmax.f32 %v1412_v3, 0.0  ;;  %v1057_v9 = vadd.f32 %v2683_v21, %v1056_v6 }
 0x238   : > { %2082 = vst.msk [vmem:[%s3022_s19 + $0x18] sm:$0xff] %vm262_vm0, %v1833_v5 }
 0x239   : > { %2052 = vst.msk [vmem:[%s2691_s4 + $0x128] sm:$0xff] %vm1138_vm2, %v1057_v9  ;;  %2363 = vmatmul.msk.f32.gmra.mxu1 %vm732_vm1, %v720_v7  ;;  %2412 = vmatmul.msk.f32.gmra.mxu2 %vm1138_vm2, %v1057_v9 }
 0x23a   : > { %2461 = vmatmul.msk.f32.gmra.mxu3 %vm732_vm1, %v1563_v8 }
 0x23c   : > { %v637_v10 = vpop.f32.mrf.mxu0  ;;  %v1414_v11 = vpop.f32.mrf.mxu2 }
 0x23d   : > { %v638_v12 = vadd.f32 %v3014_v34, %v637_v10  ;;  %v1415_v13 = vadd.f32 %v2838_v0, %v1414_v11  ;;  %v1835_v14 = vpop.f32.mrf.mxu3 }
 0x23e   : > { %v1836_v15 = vadd.f32 %v3009_v18, %v1835_v14  ;;  %v1059_v16 = vpop.f32.mrf.mxu1 }
 0x23f   : > { %v721_v17 = vmax.f32 %v638_v12, 0.0  ;;  %v1564_v19 = vmax.f32 %v1415_v13, 0.0  ;;  %v1060_v20 = vadd.f32 %v2683_v21, %v1059_v16 }
 0x240   : > { %2083 = vst.msk [vmem:[%s3022_s19 + $0x20] sm:$0xff] %vm262_vm0, %v1836_v15 }
 0x241   : > { %2053 = vst.msk [vmem:[%s2691_s4 + $0x130] sm:$0xff] %vm1138_vm2, %v1060_v20  ;;  %2364 = vmatmul.msk.f32.gmra.mxu1 %vm732_vm1, %v721_v17  ;;  %2413 = vmatmul.msk.f32.gmra.mxu2 %vm1138_vm2, %v1060_v20 }
 0x242   : > { %2462 = vmatmul.msk.f32.gmra.mxu3 %vm732_vm1, %v1564_v19 }
 0x244   : > { %v640_v22 = vpop.f32.mrf.mxu0  ;;  %v1417_v23 = vpop.f32.mrf.mxu2 }
 0x245   : > { %v641_v24 = vadd.f32 %v3014_v34, %v640_v22  ;;  %v1418_v25 = vadd.f32 %v2838_v0, %v1417_v23  ;;  %v1838_v26 = vpop.f32.mrf.mxu3 }
 0x246   : > { %v1839_v27 = vadd.f32 %v3009_v18, %v1838_v26  ;;  %v1062_v28 = vpop.f32.mrf.mxu1 }
 0x247   : > { %v722_v29 = vmax.f32 %v641_v24, 0.0  ;;  %v1565_v30 = vmax.f32 %v1418_v25, 0.0  ;;  %v1063_v31 = vadd.f32 %v2683_v21, %v1062_v28 }
 0x248   : > { %2084 = vst.msk [vmem:[%s3022_s19 + $0x28] sm:$0xff] %vm262_vm0, %v1839_v27 }
 0x249   : > { %2054 = vst.msk [vmem:[%s2691_s4 + $0x138] sm:$0xff] %vm1138_vm2, %v1063_v31  ;;  %2365 = vmatmul.msk.f32.gmra.mxu1 %vm732_vm1, %v722_v29  ;;  %2414 = vmatmul.msk.f32.gmra.mxu2 %vm1138_vm2, %v1063_v31 }
 0x24a   : > { %2463 = vmatmul.msk.f32.gmra.mxu3 %vm732_vm1, %v1565_v30 }
 0x24c   : > { %v643_v32 = vpop.f32.mrf.mxu0  ;;  %v1420_v33 = vpop.f32.mrf.mxu2 }
 0x24d   : > { %v644_v35 = vadd.f32 %v3014_v34, %v643_v32  ;;  %v1421_v36 = vadd.f32 %v2838_v0, %v1420_v33  ;;  %v1841_v37 = vpop.f32.mrf.mxu3 }
 0x24e   : > { %v1842_v21 = vadd.f32 %v3009_v18, %v1841_v37  ;;  %v1065_v38 = vpop.f32.mrf.mxu1 }
 0x24f   : > { %v723_v39 = vmax.f32 %v644_v35, 0.0  ;;  %v1566_v40 = vmax.f32 %v1421_v36, 0.0  ;;  %v1066_v42 = vadd.f32 %v3094_v41, %v1065_v38 }
 0x250   : > { %2085 = vst.msk [vmem:[%s3022_s19 + $0x30] sm:$0xff] %vm262_vm0, %v1842_v21 }
 0x251   : > { %2055 = vst.msk [vmem:[%s2691_s4 + $0x140] sm:$0xff] %vm1138_vm2, %v1066_v42  ;;  %2366 = vmatmul.msk.f32.gmra.mxu1 %vm732_vm1, %v723_v39  ;;  %2415 = vmatmul.msk.f32.gmra.mxu2 %vm1138_vm2, %v1066_v42 }
 0x252   : > { %2464 = vmatmul.msk.f32.gmra.mxu3 %vm732_vm1, %v1566_v40 }
 0x254   : > { %v646_v43 = vpop.f32.mrf.mxu0  ;;  %v1423_v44 = vpop.f32.mrf.mxu2 }
 0x255   : > { %v647_v45 = vadd.f32 %v3014_v34, %v646_v43  ;;  %v1424_v46 = vadd.f32 %v2838_v0, %v1423_v44  ;;  %v1844_v47 = vpop.f32.mrf.mxu3 }
 0x256   : > { %v1845_v48 = vadd.f32 %v3009_v18, %v1844_v47  ;;  %v1068_v49 = vpop.f32.mrf.mxu1 }
 0x257   : > { %v724_v50 = vmax.f32 %v647_v45, 0.0  ;;  %v1567_v51 = vmax.f32 %v1424_v46, 0.0  ;;  %v1069_v52 = vadd.f32 %v3094_v41, %v1068_v49 }
 0x258   : > { %2086 = vst.msk [vmem:[%s3022_s19 + $0x38] sm:$0xff] %vm262_vm0, %v1845_v48 }
 0x259   : > { %2056 = vst.msk [vmem:[%s2691_s4 + $0x148] sm:$0xff] %vm1138_vm2, %v1069_v52  ;;  %2367 = vmatmul.msk.f32.gmra.mxu1 %vm732_vm1, %v724_v50  ;;  %2416 = vmatmul.msk.f32.gmra.mxu2 %vm1138_vm2, %v1069_v52 }
 0x25a   : > { %2465 = vmatmul.msk.f32.gmra.mxu3 %vm732_vm1, %v1567_v51 }
 0x25c   : > { %v649_v53 = vpop.f32.mrf.mxu0  ;;  %v1426_v54 = vpop.f32.mrf.mxu2 }
 0x25d   : > { %v650_v55 = vadd.f32 %v3014_v34, %v649_v53  ;;  %v1427_v56 = vadd.f32 %v2838_v0, %v1426_v54  ;;  %v1847_v57 = vpop.f32.mrf.mxu3 }
 0x25e   : > { %v1848_v58 = vadd.f32 %v3009_v18, %v1847_v57  ;;  %v1071_v59 = vpop.f32.mrf.mxu1 }
 0x25f   : > { %v725_v60 = vmax.f32 %v650_v55, 0.0  ;;  %v1568_v61 = vmax.f32 %v1427_v56, 0.0  ;;  %v1072_v62 = vadd.f32 %v3094_v41, %v1071_v59 }
 0x260   : > { %2087 = vst.msk [vmem:[%s3022_s19 + $0x40] sm:$0xff] %vm262_vm0, %v1848_v58 }
 0x261   : > { %2057 = vst.msk [vmem:[%s2691_s4 + $0x150] sm:$0xff] %vm1138_vm2, %v1072_v62  ;;  %2368 = vmatmul.msk.f32.gmra.mxu1 %vm732_vm1, %v725_v60  ;;  %2417 = vmatmul.msk.f32.gmra.mxu2 %vm1138_vm2, %v1072_v62 }
 0x262   : > { %2466 = vmatmul.msk.f32.gmra.mxu3 %vm732_vm1, %v1568_v61 }
 0x264   : > { %v652_v63 = vpop.f32.mrf.mxu0  ;;  %v1429_v1 = vpop.f32.mrf.mxu2 }
 0x265   : > { %v653_v2 = vadd.f32 %v3014_v34, %v652_v63  ;;  %v1430_v3 = vadd.f32 %v2838_v0, %v1429_v1  ;;  %v1850_v4 = vpop.f32.mrf.mxu3 }
 0x266   : > { %v1851_v5 = vadd.f32 %v3009_v18, %v1850_v4  ;;  %v1074_v6 = vpop.f32.mrf.mxu1 }
 0x267   : > { %v726_v7 = vmax.f32 %v653_v2, 0.0  ;;  %v1569_v8 = vmax.f32 %v1430_v3, 0.0  ;;  %v1075_v9 = vadd.f32 %v3094_v41, %v1074_v6 }
 0x268   : > { %2088 = vst.msk [vmem:[%s3022_s19 + $0x48] sm:$0xff] %vm262_vm0, %v1851_v5 }
 0x269   : > { %2058 = vst.msk [vmem:[%s2691_s4 + $0x158] sm:$0xff] %vm1138_vm2, %v1075_v9  ;;  %2369 = vmatmul.msk.f32.gmra.mxu1 %vm732_vm1, %v726_v7  ;;  %2418 = vmatmul.msk.f32.gmra.mxu2 %vm1138_vm2, %v1075_v9 }
 0x26a   : > { %2467 = vmatmul.msk.f32.gmra.mxu3 %vm732_vm1, %v1569_v8 }
 0x26c   : > { %v655_v10 = vpop.f32.mrf.mxu0  ;;  %v1432_v11 = vpop.f32.mrf.mxu2 }
 0x26d   : > { %v656_v12 = vadd.f32 %v3014_v34, %v655_v10  ;;  %v1433_v13 = vadd.f32 %v2838_v0, %v1432_v11  ;;  %v1853_v14 = vpop.f32.mrf.mxu3 }
 0x26e   : > { %v1854_v15 = vadd.f32 %v3009_v18, %v1853_v14  ;;  %v1077_v16 = vpop.f32.mrf.mxu1 }
 0x26f   : > { %v727_v17 = vmax.f32 %v656_v12, 0.0  ;;  %v1570_v19 = vmax.f32 %v1433_v13, 0.0  ;;  %v1078_v20 = vadd.f32 %v3094_v41, %v1077_v16 }
 0x270   : > { %2089 = vst.msk [vmem:[%s3022_s19 + $0x50] sm:$0xff] %vm262_vm0, %v1854_v15 }
 0x271   : > { %2059 = vst.msk [vmem:[%s2691_s4 + $0x160] sm:$0xff] %vm1138_vm2, %v1078_v20  ;;  %2370 = vmatmul.msk.f32.gmra.mxu1 %vm732_vm1, %v727_v17  ;;  %2419 = vmatmul.msk.f32.gmra.mxu2 %vm1138_vm2, %v1078_v20 }
 0x272   : > { %2468 = vmatmul.msk.f32.gmra.mxu3 %vm732_vm1, %v1570_v19 }
 0x274   : > { %v658_v22 = vpop.f32.mrf.mxu0  ;;  %v1435_v23 = vpop.f32.mrf.mxu2 }
 0x275   : > { %v659_v24 = vadd.f32 %v3014_v34, %v658_v22  ;;  %v1436_v25 = vadd.f32 %v2838_v0, %v1435_v23  ;;  %v1856_v26 = vpop.f32.mrf.mxu3 }
 0x276   : > { %v1857_v27 = vadd.f32 %v3009_v18, %v1856_v26  ;;  %v1080_v28 = vpop.f32.mrf.mxu1 }
 0x277   : > { %v728_v29 = vmax.f32 %v659_v24, 0.0  ;;  %v1571_v30 = vmax.f32 %v1436_v25, 0.0  ;;  %v1081_v31 = vadd.f32 %v3094_v41, %v1080_v28 }
 0x278   : > { %2090 = vst.msk [vmem:[%s3022_s19 + $0x58] sm:$0xff] %vm262_vm0, %v1857_v27 }
 0x279   : > { %2060 = vst.msk [vmem:[%s2691_s4 + $0x168] sm:$0xff] %vm1138_vm2, %v1081_v31  ;;  %2371 = vmatmul.msk.f32.gmra.mxu1 %vm732_vm1, %v728_v29  ;;  %2420 = vmatmul.msk.f32.gmra.mxu2 %vm1138_vm2, %v1081_v31 }
 0x27a   : > { %2469 = vmatmul.msk.f32.gmra.mxu3 %vm732_vm1, %v1571_v30 }
 0x27c   : > { %v661_v32 = vpop.f32.mrf.mxu0  ;;  %v1438_v33 = vpop.f32.mrf.mxu2 }
 0x27d   : > { %v662_v35 = vadd.f32 %v3014_v34, %v661_v32  ;;  %v1439_v36 = vadd.f32 %v2838_v0, %v1438_v33  ;;  %v1859_v37 = vpop.f32.mrf.mxu3 }
 0x27e   : > { %v1860_v21 = vadd.f32 %v3009_v18, %v1859_v37  ;;  %v1083_v38 = vpop.f32.mrf.mxu1 }
 0x27f   : > { %v729_v39 = vmax.f32 %v662_v35, 0.0  ;;  %v1572_v40 = vmax.f32 %v1439_v36, 0.0  ;;  %v1084_v42 = vadd.f32 %v3094_v41, %v1083_v38 }
 0x280   : > { %2091 = vst.msk [vmem:[%s3022_s19 + $0x60] sm:$0xff] %vm262_vm0, %v1860_v21 }
 0x281   : > { %2061 = vst.msk [vmem:[%s2691_s4 + $0x170] sm:$0xff] %vm1138_vm2, %v1084_v42  ;;  %2372 = vmatmul.msk.f32.gmra.mxu1 %vm732_vm1, %v729_v39  ;;  %2421 = vmatmul.msk.f32.gmra.mxu2 %vm1138_vm2, %v1084_v42 }
 0x282   : > { %2470 = vmatmul.msk.f32.gmra.mxu3 %vm732_vm1, %v1572_v40 }
 0x284   : > { %v664_v43 = vpop.f32.mrf.mxu0  ;;  %v1441_v44 = vpop.f32.mrf.mxu2 }
 0x285   : > { %v665_v45 = vadd.f32 %v3014_v34, %v664_v43  ;;  %v1442_v46 = vadd.f32 %v2838_v0, %v1441_v44  ;;  %v1862_v47 = vpop.f32.mrf.mxu3 }
 0x286   : > { %v1863_v48 = vadd.f32 %v3009_v18, %v1862_v47  ;;  %v1086_v49 = vpop.f32.mrf.mxu1 }
 0x287   : > { %v730_v50 = vmax.f32 %v665_v45, 0.0  ;;  %v1573_v51 = vmax.f32 %v1442_v46, 0.0  ;;  %v1087_v52 = vadd.f32 %v3094_v41, %v1086_v49 }
 0x288   : > { %2092 = vst.msk [vmem:[%s3022_s19 + $0x68] sm:$0xff] %vm262_vm0, %v1863_v48 }
 0x289   : > { %2062 = vst.msk [vmem:[%s2691_s4 + $0x178] sm:$0xff] %vm1138_vm2, %v1087_v52  ;;  %2373 = vmatmul.msk.f32.gmra.mxu1 %vm732_vm1, %v730_v50  ;;  %2422 = vmatmul.msk.f32.gmra.mxu2 %vm1138_vm2, %v1087_v52 }
 0x28a   : > { %2471 = vmatmul.msk.f32.gmra.mxu3 %vm732_vm1, %v1573_v51 }
 0x28c   : > { %v1444_v34 = vpop.f32.mrf.mxu2 }
 0x28d   : > { %v1445_v53 = vadd.f32 %v2838_v0, %v1444_v34  ;;  %v1865_v54 = vpop.f32.mrf.mxu3 }
 0x28e   : > { %v1866_v55 = vadd.f32 %v3009_v18, %v1865_v54  ;;  %v1089_v56 = vpop.f32.mrf.mxu1 }
 0x28f   : > { %v1574_v57 = vmax.f32 %v1445_v53, 0.0  ;;  %v1090_v58 = vadd.f32 %v3094_v41, %v1089_v56 }
 0x290   : > { %2093 = vst.msk [vmem:[%s3022_s19 + $0x70] sm:$0xff] %vm262_vm0, %v1866_v55 }
 0x291   : > { %2063 = vst.msk [vmem:[%s2691_s4 + $0x180] sm:$0xff] %vm1138_vm2, %v1090_v58  ;;  %2423 = vmatmul.msk.f32.gmra.mxu2 %vm1138_vm2, %v1090_v58 }
 0x292   : > { %2472 = vmatmul.msk.f32.gmra.mxu3 %vm732_vm1, %v1574_v57 }
 0x294   : > { %v1447_v59 = vpop.f32.mrf.mxu2 }
 0x295   : > { %v1448_v60 = vadd.f32 %v2838_v0, %v1447_v59  ;;  %v1868_v61 = vpop.f32.mrf.mxu3 }
 0x296   : > { %v1869_v62 = vadd.f32 %v3009_v18, %v1868_v61  ;;  %v1092_v63 = vpop.f32.mrf.mxu1 }
 0x297   : > { %v1575_v1 = vmax.f32 %v1448_v60, 0.0  ;;  %v1093_v2 = vadd.f32 %v3094_v41, %v1092_v63 }
 0x298   : > { %2094 = vst.msk [vmem:[%s3022_s19 + $0x78] sm:$0xff] %vm262_vm0, %v1869_v62 }
 0x299   : > { %2064 = vst.msk [vmem:[%s2691_s4 + $0x188] sm:$0xff] %vm1138_vm2, %v1093_v2  ;;  %2424 = vmatmul.msk.f32.gmra.mxu2 %vm1138_vm2, %v1093_v2 }
 0x29a   : > { %2473 = vmatmul.msk.f32.gmra.mxu3 %vm732_vm1, %v1575_v1 }
 0x29c   : > { %v1450_v3 = vpop.f32.mrf.mxu2 }
 0x29d   : > { %v1451_v4 = vadd.f32 %v2838_v0, %v1450_v3  ;;  %v1871_v5 = vpop.f32.mrf.mxu3 }
 0x29e   : > { %v1872_v6 = vadd.f32 %v3009_v18, %v1871_v5  ;;  %v1095_v7 = vpop.f32.mrf.mxu1 }
 0x29f   : > { %v1576_v8 = vmax.f32 %v1451_v4, 0.0  ;;  %v1096_v9 = vadd.f32 %v3094_v41, %v1095_v7 }
 0x2a0   : > { %2095 = vst.msk [vmem:[%s3022_s19 + $0x80] sm:$0xff] %vm262_vm0, %v1872_v6 }
 0x2a1   : > { %2065 = vst.msk [vmem:[%s2691_s4 + $0x190] sm:$0xff] %vm1138_vm2, %v1096_v9  ;;  %2425 = vmatmul.msk.f32.gmra.mxu2 %vm1138_vm2, %v1096_v9 }
 0x2a2   : > { %2474 = vmatmul.msk.f32.gmra.mxu3 %vm732_vm1, %v1576_v8 }
 0x2a4   : > { %v1453_v10 = vpop.f32.mrf.mxu2 }
 0x2a5   : > { %v1454_v11 = vadd.f32 %v2838_v0, %v1453_v10  ;;  %v1874_v12 = vpop.f32.mrf.mxu3 }
 0x2a6   : > { %v1875_v13 = vadd.f32 %v3009_v18, %v1874_v12  ;;  %v1098_v14 = vpop.f32.mrf.mxu1 }
 0x2a7   : > { %v1577_v15 = vmax.f32 %v1454_v11, 0.0  ;;  %v1099_v16 = vadd.f32 %v3094_v41, %v1098_v14 }
 0x2a8   : > { %2096 = vst.msk [vmem:[%s3022_s19 + $0x88] sm:$0xff] %vm262_vm0, %v1875_v13 }
 0x2a9   : > { %2066 = vst.msk [vmem:[%s2691_s4 + $0x198] sm:$0xff] %vm1138_vm2, %v1099_v16  ;;  %2426 = vmatmul.msk.f32.gmra.mxu2 %vm1138_vm2, %v1099_v16 }
 0x2aa   : > { %2475 = vmatmul.msk.f32.gmra.mxu3 %vm732_vm1, %v1577_v15 }
 0x2ac   : > { %v1456_v17 = vpop.f32.mrf.mxu2 }
 0x2ad   : > { %v1457_v19 = vadd.f32 %v2838_v0, %v1456_v17  ;;  %v1877_v20 = vpop.f32.mrf.mxu3 }
 0x2ae   : > { %v1878_v22 = vadd.f32 %v3009_v18, %v1877_v20  ;;  %v1101_v23 = vpop.f32.mrf.mxu1 }
 0x2af   : > { %v1578_v24 = vmax.f32 %v1457_v19, 0.0  ;;  %v1102_v25 = vadd.f32 %v3094_v41, %v1101_v23 }
 0x2b0   : > { %2097 = vst.msk [vmem:[%s3022_s19 + $0x90] sm:$0xff] %vm262_vm0, %v1878_v22 }
 0x2b1   : > { %2067 = vst.msk [vmem:[%s2691_s4 + $0x1a0] sm:$0xff] %vm1138_vm2, %v1102_v25  ;;  %2427 = vmatmul.msk.f32.gmra.mxu2 %vm1138_vm2, %v1102_v25 }
 0x2b2   : > { %2476 = vmatmul.msk.f32.gmra.mxu3 %vm732_vm1, %v1578_v24 }
 0x2b4   : > { %v1459_v26 = vpop.f32.mrf.mxu2 }
 0x2b5   : > { %v1460_v27 = vadd.f32 %v2838_v0, %v1459_v26  ;;  %v1880_v28 = vpop.f32.mrf.mxu3  ;;  %v3238_v0 = vld [vmem:[%s3458_s1 + $0x20] ss:$0 sm:$0xff] }
 0x2b6   : > { %v1881_v29 = vadd.f32 %v3009_v18, %v1880_v28  ;;  %v1104_v30 = vpop.f32.mrf.mxu1 }
 0x2b7   : > { %v1579_v31 = vmax.f32 %v1460_v27, 0.0  ;;  %v1105_v32 = vadd.f32 %v3094_v41, %v1104_v30 }
 0x2b8   : > { %2098 = vst.msk [vmem:[%s3022_s19 + $0x98] sm:$0xff] %vm262_vm0, %v1881_v29 }
 0x2b9   : > { %2068 = vst.msk [vmem:[%s2691_s4 + $0x1a8] sm:$0xff] %vm1138_vm2, %v1105_v32  ;;  %2428 = vmatmul.msk.f32.gmra.mxu2 %vm1138_vm2, %v1105_v32 }
 0x2ba   : > { %2477 = vmatmul.msk.f32.gmra.mxu3 %vm732_vm1, %v1579_v31 }
 0x2bc   : > { %v1462_v33 = vpop.f32.mrf.mxu2 }
 0x2bd   : > { %v1463_v35 = vadd.f32 %v3238_v0, %v1462_v33  ;;  %v1883_v36 = vpop.f32.mrf.mxu3 }
 0x2be   : > { %v1884_v37 = vadd.f32 %v3009_v18, %v1883_v36  ;;  %v1107_v21 = vpop.f32.mrf.mxu1 }
 0x2bf   : > { %v1580_v38 = vmax.f32 %v1463_v35, 0.0  ;;  %v1108_v39 = vadd.f32 %v3094_v41, %v1107_v21 }
 0x2c0   : > { %2099 = vst.msk [vmem:[%s3022_s19 + $0xa0] sm:$0xff] %vm262_vm0, %v1884_v37 }
 0x2c1   : > { %2069 = vst.msk [vmem:[%s2691_s4 + $0x1b0] sm:$0xff] %vm1138_vm2, %v1108_v39  ;;  %2429 = vmatmul.msk.f32.gmra.mxu2 %vm1138_vm2, %v1108_v39 }
 0x2c2   : > { %2478 = vmatmul.msk.f32.gmra.mxu3 %vm732_vm1, %v1580_v38 }
 0x2c4   : > { %v1465_v40 = vpop.f32.mrf.mxu2 }
 0x2c5   : > { %v1466_v42 = vadd.f32 %v3238_v0, %v1465_v40  ;;  %v1886_v43 = vpop.f32.mrf.mxu3 }
 0x2c6   : > { %v1887_v44 = vadd.f32 %v3009_v18, %v1886_v43  ;;  %v1110_v45 = vpop.f32.mrf.mxu1 }
 0x2c7   : > { %v1581_v46 = vmax.f32 %v1466_v42, 0.0  ;;  %v1111_v47 = vadd.f32 %v3094_v41, %v1110_v45 }
 0x2c8   : > { %2100 = vst.msk [vmem:[%s3022_s19 + $0xa8] sm:$0xff] %vm262_vm0, %v1887_v44 }
 0x2c9   : > { %2070 = vst.msk [vmem:[%s2691_s4 + $0x1b8] sm:$0xff] %vm1138_vm2, %v1111_v47  ;;  %2430 = vmatmul.msk.f32.gmra.mxu2 %vm1138_vm2, %v1111_v47 }
 0x2ca   : > { %2479 = vmatmul.msk.f32.gmra.mxu3 %vm732_vm1, %v1581_v46 }
 0x2cc   : > { %v1468_v48 = vpop.f32.mrf.mxu2 }
 0x2cd   : > { %v1469_v49 = vadd.f32 %v3238_v0, %v1468_v48  ;;  %v1889_v50 = vpop.f32.mrf.mxu3 }
 0x2ce   : > { %v1890_v51 = vadd.f32 %v3009_v18, %v1889_v50  ;;  %v1113_v52 = vpop.f32.mrf.mxu1 }
 0x2cf   : > { %v1582_v34 = vmax.f32 %v1469_v49, 0.0  ;;  %v1114_v53 = vadd.f32 %v3094_v41, %v1113_v52 }
 0x2d0   : > { %2101 = vst.msk [vmem:[%s3022_s19 + $0xb0] sm:$0xff] %vm262_vm0, %v1890_v51 }
 0x2d1   : > { %2071 = vst.msk [vmem:[%s2691_s4 + $0x1c0] sm:$0xff] %vm1138_vm2, %v1114_v53  ;;  %2431 = vmatmul.msk.f32.gmra.mxu2 %vm1138_vm2, %v1114_v53 }
 0x2d2   : > { %2480 = vmatmul.msk.f32.gmra.mxu3 %vm732_vm1, %v1582_v34 }
 0x2d4   : > { %v1471_v54 = vpop.f32.mrf.mxu2 }
 0x2d5   : > { %v1472_v55 = vadd.f32 %v3238_v0, %v1471_v54  ;;  %v1892_v56 = vpop.f32.mrf.mxu3 }
 0x2d6   : > { %v1893_v57 = vadd.f32 %v3009_v18, %v1892_v56  ;;  %v1116_v58 = vpop.f32.mrf.mxu1 }
 0x2d7   : > { %v1583_v59 = vmax.f32 %v1472_v55, 0.0  ;;  %v1117_v60 = vadd.f32 %v3094_v41, %v1116_v58 }
 0x2d8   : > { %2102 = vst.msk [vmem:[%s3022_s19 + $0xb8] sm:$0xff] %vm262_vm0, %v1893_v57 }
 0x2d9   : > { %2072 = vst.msk [vmem:[%s2691_s4 + $0x1c8] sm:$0xff] %vm1138_vm2, %v1117_v60  ;;  %2432 = vmatmul.msk.f32.gmra.mxu2 %vm1138_vm2, %v1117_v60 }
 0x2da   : > { %2481 = vmatmul.msk.f32.gmra.mxu3 %vm732_vm1, %v1583_v59 }
 0x2dc   : > { %v1474_v61 = vpop.f32.mrf.mxu2 }
 0x2dd   : > { %v1475_v62 = vadd.f32 %v3238_v0, %v1474_v61  ;;  %v1895_v63 = vpop.f32.mrf.mxu3 }
 0x2de   : > { %v1896_v1 = vadd.f32 %v3009_v18, %v1895_v63  ;;  %v1119_v2 = vpop.f32.mrf.mxu1 }
 0x2df   : > { %v1584_v3 = vmax.f32 %v1475_v62, 0.0  ;;  %v1120_v4 = vadd.f32 %v3094_v41, %v1119_v2 }
 0x2e0   : > { %2103 = vst.msk [vmem:[%s3022_s19 + $0xc0] sm:$0xff] %vm262_vm0, %v1896_v1 }
 0x2e1   : > { %2073 = vst.msk [vmem:[%s2691_s4 + $0x1d0] sm:$0xff] %vm1138_vm2, %v1120_v4  ;;  %2433 = vmatmul.msk.f32.gmra.mxu2 %vm1138_vm2, %v1120_v4 }
 0x2e2   : > { %2482 = vmatmul.msk.f32.gmra.mxu3 %vm732_vm1, %v1584_v3 }
 0x2e4   : > { %v1477_v5 = vpop.f32.mrf.mxu2 }
 0x2e5   : > { %v1478_v6 = vadd.f32 %v3238_v0, %v1477_v5  ;;  %v1898_v7 = vpop.f32.mrf.mxu3 }
 0x2e6   : > { %v1899_v8 = vadd.f32 %v3009_v18, %v1898_v7  ;;  %v1122_v9 = vpop.f32.mrf.mxu1 }
 0x2e7   : > { %v1585_v10 = vmax.f32 %v1478_v6, 0.0  ;;  %v1123_v11 = vadd.f32 %v3094_v41, %v1122_v9 }
 0x2e8   : > { %2104 = vst.msk [vmem:[%s3022_s19 + $0xc8] sm:$0xff] %vm262_vm0, %v1899_v8 }
 0x2e9   : > { %2074 = vst.msk [vmem:[%s2691_s4 + $0x1d8] sm:$0xff] %vm1138_vm2, %v1123_v11  ;;  %2434 = vmatmul.msk.f32.gmra.mxu2 %vm1138_vm2, %v1123_v11 }
 0x2ea   : > { %2483 = vmatmul.msk.f32.gmra.mxu3 %vm732_vm1, %v1585_v10 }
 0x2ec   : > { %v1480_v12 = vpop.f32.mrf.mxu2 }
 0x2ed   : > { %v1481_v13 = vadd.f32 %v3238_v0, %v1480_v12  ;;  %v1901_v14 = vpop.f32.mrf.mxu3 }
 0x2ee   : > { %v1902_v15 = vadd.f32 %v3009_v18, %v1901_v14  ;;  %v1125_v16 = vpop.f32.mrf.mxu1 }
 0x2ef   : > { %v1586_v17 = vmax.f32 %v1481_v13, 0.0  ;;  %v1126_v19 = vadd.f32 %v3094_v41, %v1125_v16 }
 0x2f0   : > { %2105 = vst.msk [vmem:[%s3022_s19 + $0xd0] sm:$0xff] %vm262_vm0, %v1902_v15 }
 0x2f1   : > { %2075 = vst.msk [vmem:[%s2691_s4 + $0x1e0] sm:$0xff] %vm1138_vm2, %v1126_v19  ;;  %2435 = vmatmul.msk.f32.gmra.mxu2 %vm1138_vm2, %v1126_v19 }
 0x2f2   : > { %2484 = vmatmul.msk.f32.gmra.mxu3 %vm732_vm1, %v1586_v17 }
 0x2f4   : > { %v1483_v20 = vpop.f32.mrf.mxu2 }
 0x2f5   : > { %v1484_v22 = vadd.f32 %v3238_v0, %v1483_v20  ;;  %v1904_v23 = vpop.f32.mrf.mxu3 }
 0x2f6   : > { %v1905_v24 = vadd.f32 %v3009_v18, %v1904_v23  ;;  %v1128_v25 = vpop.f32.mrf.mxu1 }
 0x2f7   : > { %v1587_v26 = vmax.f32 %v1484_v22, 0.0  ;;  %v1129_v27 = vadd.f32 %v3094_v41, %v1128_v25 }
 0x2f8   : > { %2106 = vst.msk [vmem:[%s3022_s19 + $0xd8] sm:$0xff] %vm262_vm0, %v1905_v24 }
 0x2f9   : > { %2076 = vst.msk [vmem:[%s2691_s4 + $0x1e8] sm:$0xff] %vm1138_vm2, %v1129_v27  ;;  %2436 = vmatmul.msk.f32.gmra.mxu2 %vm1138_vm2, %v1129_v27 }
 0x2fa   : > { %2485 = vmatmul.msk.f32.gmra.mxu3 %vm732_vm1, %v1587_v26 }
 0x2fc   : > { %v1486_v28 = vpop.f32.mrf.mxu2 }
 0x2fd   : > { %v1487_v29 = vadd.f32 %v3238_v0, %v1486_v28  ;;  %v1907_v30 = vpop.f32.mrf.mxu3 }
 0x2fe   : > { %v1908_v31 = vadd.f32 %v3009_v18, %v1907_v30  ;;  %v1131_v32 = vpop.f32.mrf.mxu1 }
 0x2ff   : > { %v1588_v33 = vmax.f32 %v1487_v29, 0.0  ;;  %v1132_v35 = vadd.f32 %v3094_v41, %v1131_v32 }
 0x300   : > { %2107 = vst.msk [vmem:[%s3022_s19 + $0xe0] sm:$0xff] %vm262_vm0, %v1908_v31 }
 0x301   : > { %2077 = vst.msk [vmem:[%s2691_s4 + $0x1f0] sm:$0xff] %vm1138_vm2, %v1132_v35  ;;  %2437 = vmatmul.msk.f32.gmra.mxu2 %vm1138_vm2, %v1132_v35 }
 0x302   : > { %2486 = vmatmul.msk.f32.gmra.mxu3 %vm732_vm1, %v1588_v33 }
 0x304   : > { %v1489_v36 = vpop.f32.mrf.mxu2 }
 0x305   : > { %v1490_v37 = vadd.f32 %v3238_v0, %v1489_v36  ;;  %v1910_v21 = vpop.f32.mrf.mxu3 }
 0x306   : > { %v1911_v38 = vadd.f32 %v3009_v18, %v1910_v21  ;;  %v1134_v39 = vpop.f32.mrf.mxu1 }
 0x307   : > { %v1589_v40 = vmax.f32 %v1490_v37, 0.0  ;;  %v1135_v42 = vadd.f32 %v3094_v41, %v1134_v39 }
 0x308   : > { %2108 = vst.msk [vmem:[%s3022_s19 + $0xe8] sm:$0xff] %vm262_vm0, %v1911_v38 }
 0x309   : > { %2078 = vst.msk [vmem:[%s2691_s4 + $0x1f8] sm:$0xff] %vm1138_vm2, %v1135_v42  ;;  %2438 = vmatmul.msk.f32.gmra.mxu2 %vm1138_vm2, %v1135_v42 }
 0x30a   : > { %2487 = vmatmul.msk.f32.gmra.mxu3 %vm732_vm1, %v1589_v40 }
 0x30c   : > { %v1492_v43 = vpop.f32.mrf.mxu2 }
 0x30d   : > { %v1493_v44 = vadd.f32 %v3238_v0, %v1492_v43  ;;  %v1913_v45 = vpop.f32.mrf.mxu3 }
 0x30e   : > { %v1914_v46 = vadd.f32 %v3009_v18, %v1913_v45 }
 0x30f   : > { %v1590_v47 = vmax.f32 %v1493_v44, 0.0 }
 0x310   : > { %2109 = vst.msk [vmem:[%s3022_s19 + $0xf0] sm:$0xff] %vm262_vm0, %v1914_v46 }
 0x312   : > { %2488 = vmatmul.msk.f32.gmra.mxu3 %vm732_vm1, %v1590_v47 }
 0x314   : > { %v1495_v41 = vpop.f32.mrf.mxu2 }
 0x315   : > { %v1496_v48 = vadd.f32 %v3238_v0, %v1495_v41  ;;  %v1916_v49 = vpop.f32.mrf.mxu3 }
 0x316   : > { %v1917_v50 = vadd.f32 %v3009_v18, %v1916_v49 }
 0x317   : > { %v1591_v51 = vmax.f32 %v1496_v48, 0.0 }
 0x318   : > { %2110 = vst.msk [vmem:[%s3022_s19 + $0xf8] sm:$0xff] %vm262_vm0, %v1917_v50 }
 0x31a   : > { %2489 = vmatmul.msk.f32.gmra.mxu3 %vm732_vm1, %v1591_v51 }
 0x31c   : > { %v1498_v52 = vpop.f32.mrf.mxu2 }
 0x31d   : > { %v1499_v34 = vadd.f32 %v3238_v0, %v1498_v52  ;;  %v1919_v53 = vpop.f32.mrf.mxu3 }
 0x31e   : > { %v1920_v54 = vadd.f32 %v3009_v18, %v1919_v53 }
 0x31f   : > { %v1592_v55 = vmax.f32 %v1499_v34, 0.0 }
 0x320   : > { %2111 = vst.msk [vmem:[%s3022_s19 + $0x100] sm:$0xff] %vm262_vm0, %v1920_v54 }
 0x322   : > { %2490 = vmatmul.msk.f32.gmra.mxu3 %vm732_vm1, %v1592_v55 }
 0x324   : > { %v1501_v56 = vpop.f32.mrf.mxu2 }
 0x325   : > { %v1502_v57 = vadd.f32 %v3238_v0, %v1501_v56  ;;  %v1922_v58 = vpop.f32.mrf.mxu3 }
 0x326   : > { %v1923_v59 = vadd.f32 %v3009_v18, %v1922_v58 }
 0x327   : > { %v1593_v60 = vmax.f32 %v1502_v57, 0.0 }
 0x328   : > { %2112 = vst.msk [vmem:[%s3022_s19 + $0x108] sm:$0xff] %vm262_vm0, %v1923_v59 }
 0x32a   : > { %2491 = vmatmul.msk.f32.gmra.mxu3 %vm732_vm1, %v1593_v60 }
 0x32c   : > { %v1504_v61 = vpop.f32.mrf.mxu2 }
 0x32d   : > { %v1505_v62 = vadd.f32 %v3238_v0, %v1504_v61  ;;  %v1925_v63 = vpop.f32.mrf.mxu3 }
 0x32e   : > { %v1926_v1 = vadd.f32 %v3009_v18, %v1925_v63 }
 0x32f   : > { %v1594_v2 = vmax.f32 %v1505_v62, 0.0 }
 0x330   : > { %2113 = vst.msk [vmem:[%s3022_s19 + $0x110] sm:$0xff] %vm262_vm0, %v1926_v1 }
 0x332   : > { %2492 = vmatmul.msk.f32.gmra.mxu3 %vm732_vm1, %v1594_v2 }
 0x334   : > { %v1507_v3 = vpop.f32.mrf.mxu2 }
 0x335   : > { %v1508_v4 = vadd.f32 %v3238_v0, %v1507_v3  ;;  %v1928_v5 = vpop.f32.mrf.mxu3 }
 0x336   : > { %v1929_v6 = vadd.f32 %v3009_v18, %v1928_v5  ;;  %v2522_v5 = vld [vmem:[%s3458_s1 + $0x38] ss:$0 sm:$0xff] }
 0x337   : > { %v1595_v7 = vmax.f32 %v1508_v4, 0.0 }
 0x338   : > { %2114 = vst.msk [vmem:[%s3022_s19 + $0x118] sm:$0xff] %vm262_vm0, %v1929_v6 }
 0x33a   : > { %2493 = vmatmul.msk.f32.gmra.mxu3 %vm732_vm1, %v1595_v7 }
 0x33c   : > { %v1510_v8 = vpop.f32.mrf.mxu2 }
 0x33d   : > { %v1511_v9 = vadd.f32 %v3238_v0, %v1510_v8  ;;  %v1931_v10 = vpop.f32.mrf.mxu3 }
 0x33e   : > { %v1932_v11 = vadd.f32 %v3009_v18, %v1931_v10 }
 0x33f   : > { %v1596_v12 = vmax.f32 %v1511_v9, 0.0 }
 0x340   : > { %2115 = vst.msk [vmem:[%s3022_s19 + $0x120] sm:$0xff] %vm262_vm0, %v1932_v11 }
 0x342   : > { %2494 = vmatmul.msk.f32.gmra.mxu3 %vm732_vm1, %v1596_v12 }
 0x344   : > { %v1513_v13 = vpop.f32.mrf.mxu2 }
 0x345   : > { %v1514_v14 = vadd.f32 %v3238_v0, %v1513_v13  ;;  %v1934_v15 = vpop.f32.mrf.mxu3 }
 0x346   : > { %v1935_v16 = vadd.f32 %v3009_v18, %v1934_v15 }
 0x347   : > { %v1597_v17 = vmax.f32 %v1514_v14, 0.0 }
 0x348   : > { %2116 = vst.msk [vmem:[%s3022_s19 + $0x128] sm:$0xff] %vm262_vm0, %v1935_v16 }
 0x34a   : > { %2495 = vmatmul.msk.f32.gmra.mxu3 %vm732_vm1, %v1597_v17 }
 0x34c   : > { %v1516_v19 = vpop.f32.mrf.mxu2 }
 0x34d   : > { %v1517_v20 = vadd.f32 %v3238_v0, %v1516_v19  ;;  %v1937_v22 = vpop.f32.mrf.mxu3 }
 0x34e   : > { %v1938_v23 = vadd.f32 %v3009_v18, %v1937_v22 }
 0x34f   : > { %v1598_v24 = vmax.f32 %v1517_v20, 0.0 }
 0x350   : > { %2117 = vst.msk [vmem:[%s3022_s19 + $0x130] sm:$0xff] %vm262_vm0, %v1938_v23 }
 0x352   : > { %2496 = vmatmul.msk.f32.gmra.mxu3 %vm732_vm1, %v1598_v24 }
 0x354   : > { %v1519_v25 = vpop.f32.mrf.mxu2 }
 0x355   : > { %v1520_v26 = vadd.f32 %v3238_v0, %v1519_v25  ;;  %v1940_v27 = vpop.f32.mrf.mxu3 }
 0x356   : > { %v1941_v28 = vadd.f32 %v3009_v18, %v1940_v27 }
 0x357   : > { %v1599_v29 = vmax.f32 %v1520_v26, 0.0 }
 0x358   : > { %2118 = vst.msk [vmem:[%s3022_s19 + $0x138] sm:$0xff] %vm262_vm0, %v1941_v28 }
 0x35a   : > { %2497 = vmatmul.msk.f32.gmra.mxu3 %vm732_vm1, %v1599_v29 }
 0x35c   : > { %v1522_v30 = vpop.f32.mrf.mxu2 }
 0x35d   : > { %v1523_v31 = vadd.f32 %v3238_v0, %v1522_v30  ;;  %v1943_v32 = vpop.f32.mrf.mxu3 }
 0x35e   : > { %v1944_v33 = vadd.f32 %v3009_v18, %v1943_v32 }
 0x35f   : > { %v1600_v35 = vmax.f32 %v1523_v31, 0.0 }
 0x360   : > { %2119 = vst.msk [vmem:[%s3022_s19 + $0x140] sm:$0xff] %vm262_vm0, %v1944_v33 }
 0x362   : > { %2498 = vmatmul.msk.f32.gmra.mxu3 %vm732_vm1, %v1600_v35 }
 0x364   : > { %v1525_v36 = vpop.f32.mrf.mxu2 }
 0x365   : > { %v1526_v37 = vadd.f32 %v3238_v0, %v1525_v36  ;;  %v1946_v21 = vpop.f32.mrf.mxu3 }
 0x366   : > { %v1947_v38 = vadd.f32 %v3009_v18, %v1946_v21 }
 0x367   : > { %v1601_v39 = vmax.f32 %v1526_v37, 0.0 }
 0x368   : > { %2120 = vst.msk [vmem:[%s3022_s19 + $0x148] sm:$0xff] %vm262_vm0, %v1947_v38 }
 0x36a   : > { %2499 = vmatmul.msk.f32.gmra.mxu3 %vm732_vm1, %v1601_v39 }
 0x36c   : > { %v1528_v40 = vpop.f32.mrf.mxu2 }
 0x36d   : > { %v1529_v42 = vadd.f32 %v3238_v0, %v1528_v40  ;;  %v1949_v43 = vpop.f32.mrf.mxu3 }
 0x36e   : > { %v1950_v44 = vadd.f32 %v3009_v18, %v1949_v43 }
 0x36f   : > { %v1602_v45 = vmax.f32 %v1529_v42, 0.0 }
 0x370   : > { %2121 = vst.msk [vmem:[%s3022_s19 + $0x150] sm:$0xff] %vm262_vm0, %v1950_v44 }
 0x372   : > { %2500 = vmatmul.msk.f32.gmra.mxu3 %vm732_vm1, %v1602_v45 }
 0x374   : > { %v1531_v46 = vpop.f32.mrf.mxu2 }
 0x375   : > { %v1532_v47 = vadd.f32 %v3238_v0, %v1531_v46  ;;  %v1952_v41 = vpop.f32.mrf.mxu3 }
 0x376   : > { %v1953_v48 = vadd.f32 %v3009_v18, %v1952_v41 }
 0x377   : > { %v1603_v49 = vmax.f32 %v1532_v47, 0.0 }
 0x378   : > { %2122 = vst.msk [vmem:[%s3022_s19 + $0x158] sm:$0xff] %vm262_vm0, %v1953_v48 }
 0x37a   : > { %2501 = vmatmul.msk.f32.gmra.mxu3 %vm732_vm1, %v1603_v49 }
 0x37c   : > { %v1534_v50 = vpop.f32.mrf.mxu2 }
 0x37d   : > { %v1535_v51 = vadd.f32 %v3238_v0, %v1534_v50  ;;  %v1955_v52 = vpop.f32.mrf.mxu3 }
 0x37e   : > { %v1956_v34 = vadd.f32 %v3009_v18, %v1955_v52 }
 0x37f   : > { %v1604_v53 = vmax.f32 %v1535_v51, 0.0 }
 0x380   : > { %2123 = vst.msk [vmem:[%s3022_s19 + $0x160] sm:$0xff] %vm262_vm0, %v1956_v34 }
 0x382   : > { %2502 = vmatmul.msk.f32.gmra.mxu3 %vm732_vm1, %v1604_v53 }
 0x384   : > { %v1537_v54 = vpop.f32.mrf.mxu2 }
 0x385   : > { %v1538_v55 = vadd.f32 %v3238_v0, %v1537_v54  ;;  %v1958_v56 = vpop.f32.mrf.mxu3 }
 0x386   : > { %v1959_v57 = vadd.f32 %v3009_v18, %v1958_v56 }
 0x387   : > { %v1605_v58 = vmax.f32 %v1538_v55, 0.0 }
 0x388   : > { %2124 = vst.msk [vmem:[%s3022_s19 + $0x168] sm:$0xff] %vm262_vm0, %v1959_v57 }
 0x38a   : > { %2503 = vmatmul.msk.f32.gmra.mxu3 %vm732_vm1, %v1605_v58 }
 0x38c   : > { %v1540_v59 = vpop.f32.mrf.mxu2 }
 0x38d   : > { %v1541_v60 = vadd.f32 %v3238_v0, %v1540_v59  ;;  %v1961_v61 = vpop.f32.mrf.mxu3 }
 0x38e   : > { %v1962_v62 = vadd.f32 %v3009_v18, %v1961_v61 }
 0x38f   : > { %v1606_v63 = vmax.f32 %v1541_v60, 0.0 }
 0x390   : > { %2125 = vst.msk [vmem:[%s3022_s19 + $0x170] sm:$0xff] %vm262_vm0, %v1962_v62 }
 0x392   : > { %2504 = vmatmul.msk.f32.gmra.mxu3 %vm732_vm1, %v1606_v63 }
 0x395   : > { %v1964_v1 = vpop.f32.mrf.mxu3 }
 0x396   : > { %v1965_v2 = vadd.f32 %v3009_v18, %v1964_v1 }
 0x398   : > { %2126 = vst.msk [vmem:[%s3022_s19 + $0x178] sm:$0xff] %vm262_vm0, %v1965_v2 }
 0x39d   : > { %v1967_v3 = vpop.f32.mrf.mxu3 }
 0x39e   : > { %v1968_v4 = vadd.f32 %v3009_v18, %v1967_v3 }
 0x3a0   : > { %2127 = vst.msk [vmem:[%s3022_s19 + $0x180] sm:$0xff] %vm262_vm0, %v1968_v4 }
 0x3a5   : > { %v1970_v0 = vpop.f32.mrf.mxu3 }
 0x3a6   : > { %v1971_v6 = vadd.f32 %v2522_v5, %v1970_v0 }
 0x3a8   : > { %2128 = vst.msk [vmem:[%s3022_s19 + $0x188] sm:$0xff] %vm262_vm0, %v1971_v6 }
 0x3ad   : > { %v1973_v7 = vpop.f32.mrf.mxu3 }
 0x3ae   : > { %v1974_v8 = vadd.f32 %v2522_v5, %v1973_v7 }
 0x3b0   : > { %2129 = vst.msk [vmem:[%s3022_s19 + $0x190] sm:$0xff] %vm262_vm0, %v1974_v8 }
 0x3b5   : > { %v1976_v9 = vpop.f32.mrf.mxu3 }
 0x3b6   : > { %v1977_v10 = vadd.f32 %v2522_v5, %v1976_v9 }
 0x3b8   : > { %2130 = vst.msk [vmem:[%s3022_s19 + $0x198] sm:$0xff] %vm262_vm0, %v1977_v10 }
 0x3bd   : > { %v1979_v18 = vpop.f32.mrf.mxu3 }
 0x3be   : > { %v1980_v11 = vadd.f32 %v2522_v5, %v1979_v18 }
 0x3c0   : > { %2131 = vst.msk [vmem:[%s3022_s19 + $0x1a0] sm:$0xff] %vm262_vm0, %v1980_v11 }
 0x3c5   : > { %v1982_v12 = vpop.f32.mrf.mxu3 }
 0x3c6   : > { %v1983_v13 = vadd.f32 %v2522_v5, %v1982_v12 }
 0x3c8   : > { %2132 = vst.msk [vmem:[%s3022_s19 + $0x1a8] sm:$0xff] %vm262_vm0, %v1983_v13 }
 0x3cd   : > { %v1985_v14 = vpop.f32.mrf.mxu3 }
 0x3ce   : > { %v1986_v15 = vadd.f32 %v2522_v5, %v1985_v14 }
 0x3d0   : > { %2133 = vst.msk [vmem:[%s3022_s19 + $0x1b0] sm:$0xff] %vm262_vm0, %v1986_v15 }
 0x3d5   : > { %v1988_v16 = vpop.f32.mrf.mxu3 }
 0x3d6   : > { %v1989_v17 = vadd.f32 %v2522_v5, %v1988_v16 }
 0x3d8   : > { %2134 = vst.msk [vmem:[%s3022_s19 + $0x1b8] sm:$0xff] %vm262_vm0, %v1989_v17 }
 0x3dd   : > { %v1991_v19 = vpop.f32.mrf.mxu3 }
 0x3de   : > { %v1992_v20 = vadd.f32 %v2522_v5, %v1991_v19 }
 0x3e0   : > { %2135 = vst.msk [vmem:[%s3022_s19 + $0x1c0] sm:$0xff] %vm262_vm0, %v1992_v20 }
 0x3e5   : > { %v1994_v22 = vpop.f32.mrf.mxu3 }
 0x3e6   : > { %v1995_v23 = vadd.f32 %v2522_v5, %v1994_v22 }
 0x3e8   : > { %2136 = vst.msk [vmem:[%s3022_s19 + $0x1c8] sm:$0xff] %vm262_vm0, %v1995_v23 }
 0x3ed   : > { %v1997_v24 = vpop.f32.mrf.mxu3 }
 0x3ee   : > { %v1998_v25 = vadd.f32 %v2522_v5, %v1997_v24 }
 0x3f0   : > { %2137 = vst.msk [vmem:[%s3022_s19 + $0x1d0] sm:$0xff] %vm262_vm0, %v1998_v25 }
 0x3f5   : > { %v2000_v26 = vpop.f32.mrf.mxu3 }
 0x3f6   : > { %v2001_v27 = vadd.f32 %v2522_v5, %v2000_v26 }
 0x3f8   : > { %2138 = vst.msk [vmem:[%s3022_s19 + $0x1d8] sm:$0xff] %vm262_vm0, %v2001_v27 }
 0x3fd   : > { %v2003_v28 = vpop.f32.mrf.mxu3 }
 0x3fe   : > { %v2004_v29 = vadd.f32 %v2522_v5, %v2003_v28 }
 0x400   : > { %2139 = vst.msk [vmem:[%s3022_s19 + $0x1e0] sm:$0xff] %vm262_vm0, %v2004_v29 }
 0x405   : > { %v2006_v30 = vpop.f32.mrf.mxu3 }
 0x406   : > { %v2007_v31 = vadd.f32 %v2522_v5, %v2006_v30 }
 0x408   : > { %2140 = vst.msk [vmem:[%s3022_s19 + $0x1e8] sm:$0xff] %vm262_vm0, %v2007_v31 }
 0x40d   : > { %v2009_v32 = vpop.f32.mrf.mxu3 }
 0x40e   : > { %v2010_v33 = vadd.f32 %v2522_v5, %v2009_v32 }
 0x410   : > { %2141 = vst.msk [vmem:[%s3022_s19 + $0x1f0] sm:$0xff] %vm262_vm0, %v2010_v33 }
 0x415   : > { %v2012_v35 = vpop.f32.mrf.mxu3 }
 0x416   : > { %v2013_v36 = vadd.f32 %v2522_v5, %v2012_v35 }
 0x418   : > { %2142 = vst.msk [vmem:[%s3022_s19 + $0x1f8] sm:$0xff] %vm262_vm0, %v2013_v36 }
 0x419 PF: > { %s14_s12 = sadd.s32 1, %s2529_s12  }
 0x41a   : > { %p11_p4 = scmp.ge.s32.totalorder %s14_s12, 4  }
 0x41c   :  { %13 = sbr.rel (!%p11_p4) target bundleno = 1 (0x1), region = 70 }

</bundles_post_ra>
